<compile_context>
chip_gen: v6e
topology: v6e:2x2x1
jax: 0.10.0
libtpu: 0.0.40
codegen_flags: <defaults>
</compile_context>

<pallas_src>
import math
from functools import partial

import jax
import jax.numpy as jnp
from jax.experimental import pallas as pl
from jax.experimental.pallas import tpu as pltpu
from jax.scipy.linalg import block_diag


def _round_up(n, m):
    return ((n + m - 1) // m) * m


def _res_spec():
    # Whole-array VMEM resident: constant window -> single copy, no per-step DMA.
    return pl.BlockSpec(memory_space=pltpu.MemorySpace.VMEM)


def _vmem_limit_bytes():
    cap = 64 * 1024 * 1024                  # conservative default (v7x per-core)
    try:
        cap = int(pltpu.get_tpu_info().vmem_capacity_bytes)
    except Exception:
        pass
    # ~60% of physical, clamped: ~38 MiB on v7x (64 MiB), 64 MiB on v5e/v6e (128 MiB)
    return int(min(max(cap * 6 // 10, 32 * 1024 * 1024), 64 * 1024 * 1024))


def _chip_has_bf16_vpu():
    # v5e and older have no bf16 VALU/EUP -> keep elementwise math in f32 there.
    try:
        kind = jax.devices()[0].device_kind.lower()
    except Exception:
        return True
    return not any(t in kind for t in ("v2", "v3", "v4", "v5"))


def _topk_gate(probs, k):
    """gate[t,h] = probs[t,h] if h among top-k of probs[t,:] else 0.
    Exactly k picks, first-index tie-break (reference keeps all ties; only
    diverges on exact probability ties)."""
    H = probs.shape[-1]
    iota = jax.lax.broadcasted_iota(jnp.int32, probs.shape, dimension=1)
    gate = jnp.zeros_like(probs)
    remaining = probs
    for _ in range(k):
        m = jnp.max(remaining, axis=-1, keepdims=True)
        cand = jnp.where(remaining == m, iota, H)
        idx = jnp.min(cand, axis=-1, keepdims=True)       # first argmax
        onehot = iota == idx
        gate = jnp.where(onehot, probs, gate)
        remaining = jnp.where(onehot, -jnp.inf, remaining)
    return gate


def sparse_query_kernel(scale_ref, x_ref, wr_ref, centT_ref, chalf_ref,
                        win_ref, wout_ref, exp_ref, out_ref, *,
                        top_k, exact, gelu_bf16, fused, num_heads, hid_pad):
    # exact=True  -> f32 path: HIGHEST matmuls + exact softmax division.
    # exact=False -> bf16 fast path: single-pass bf16 MXU, approx reciprocal.
    mm_prec = (jax.lax.Precision.HIGHEST if exact
               else jax.lax.Precision.DEFAULT)

    x = x_ref[...]                                               # [TM, F_pad]

    # --- GMM routing (log-posterior) + softmax ---
    z = jnp.dot(x, wr_ref[...], precision=mm_prec,
                preferred_element_type=jnp.float32)              # [TM, G_pad]
    cross = jnp.dot(z.astype(centT_ref.dtype), centT_ref[...],
                    precision=mm_prec,
                    preferred_element_type=jnp.float32)          # [TM, H]
    z_sq = jnp.sum(z * z, axis=-1, keepdims=True)                # [TM, 1]
    logits = (cross - 0.5 * z_sq - chalf_ref[...]) * scale_ref[0, 0]
    m = jnp.max(logits, axis=-1, keepdims=True)
    e = jnp.exp(logits - m)
    denom = jnp.sum(e, axis=-1, keepdims=True)
    if exact:
        probs = e / denom
    else:
        probs = e * pl.reciprocal(denom, approx=True)            # EUP slot

    gate = _topk_gate(probs, top_k)                              # [TM, H]
    # expand gate [TM, H] -> per-output-column gate [TM, OUTW] (zero in pad
    # columns) with a tiny K=H matmul -> one lane-dense gating multiply.
    gate_full = jnp.dot(gate.astype(exp_ref.dtype), exp_ref[...],
                        precision=mm_prec,
                        preferred_element_type=jnp.float32)      # [TM, OUTW]

    # --- expert MLP over all heads ---
    hid = jnp.dot(x, win_ref[...], precision=mm_prec,
                  preferred_element_type=jnp.float32)            # [TM, HIDW]
    if gelu_bf16:
        hid = hid.astype(jnp.bfloat16)   # bf16 VALU on v6e/v7x: ~2x fewer slots
    # exact (erf) GELU, matching torch.nn.functional.gelu default
    hid = 0.5 * hid * (1.0 + jax.lax.erf(hid * (1.0 / math.sqrt(2.0))))
    hid = hid.astype(wout_ref.dtype)

    if fused:
        # small-H path: block-diagonal W_out, one lane-dense matmul
        out = jnp.dot(hid, wout_ref[...], precision=mm_prec,
                      preferred_element_type=jnp.float32)        # [TM, OUTW]
    else:
        # large-H path: per-head dense dots (no H x zero-multiply waste)
        outs = []
        for h in range(num_heads):
            hid_h = hid[:, h * hid_pad:(h + 1) * hid_pad]        # lane-aligned
            outs.append(jnp.dot(hid_h, wout_ref[h], precision=mm_prec,
                                preferred_element_type=jnp.float32))
        out = jnp.concatenate(outs, axis=-1)                     # [TM, OUTW]

    # single lane-dense store of the whole tile, in the compute dtype
    out_ref[...] = (out * gate_full).astype(out_ref.dtype)


def pack_sparse_query_params(params, *, num_heads, head_dim,
                             compute_dtype=jnp.bfloat16, fuse_max_heads=8):
    """Build padded / fused weight layouts once (hoisted out of the forward)."""
    wr = jnp.asarray(params["w_router"])                              # [F, G]
    cent = jnp.asarray(params["head_centroids"]).astype(jnp.float32)  # [H, G]
    temp = jnp.asarray(params["temperature"]).astype(jnp.float32)
    win = jnp.asarray(params["input_experts"])                        # [H, F, HID]
    wout = jnp.asarray(params["output_experts"])                      # [H, HID, D]

    H, D = num_heads, head_dim
    F, G = wr.shape
    HID = win.shape[2]
    fused = H <= fuse_max_heads
    F_pad, G_pad = _round_up(F, 128), _round_up(G, 128)

    wr_p = jnp.zeros((F_pad, G_pad), compute_dtype).at[:F, :G].set(
        wr.astype(compute_dtype))
    centT = jnp.zeros((G_pad, H), compute_dtype).at[:G, :].set(
        cent.T.astype(compute_dtype))
    chalf = (0.5 * jnp.sum(cent * cent, axis=-1)).reshape(1, H)       # f32
    # (1/sqrt(G)) * exp(temperature), with the *unpadded* gating size G
    scale = (jnp.exp(temp) / math.sqrt(G)).reshape(1, 1).astype(jnp.float32)

    if fused:
        # W_in fused across heads [F, H*HID]; W_out block-diagonal [H*HID, H*D]
        HIDT = H * HID
        hid_pad = HID                    # unused by the fused kernel path
        HIDW = _round_up(HIDT, 128)
        OUT = H * D
        OUTW = _round_up(OUT, 128)
        win_flat = jnp.transpose(win, (1, 0, 2)).reshape(F, HIDT)
        win_p = jnp.zeros((F_pad, HIDW), compute_dtype).at[:F, :HIDT].set(
            win_flat.astype(compute_dtype))
        wout_bd = block_diag(*[wout[h] for h in range(H)])
        wout_p = jnp.zeros((HIDW, OUTW), compute_dtype).at[:HIDT, :OUT].set(
            wout_bd.astype(compute_dtype))
        exp_block = jnp.ones((D,), jnp.float32)
    else:
        # per-head lane-aligned layout: [F_pad, H*HID_pad] + [H, HID_pad, D_pad]
        hid_pad = _round_up(HID, 128)
        D_pad = _round_up(D, 128)
        OUTW = H * D_pad
        win3 = jnp.pad(win, ((0, 0), (0, F_pad - F), (0, hid_pad - HID)))
        win_p = jnp.transpose(win3, (1, 0, 2)).reshape(
            F_pad, H * hid_pad).astype(compute_dtype)
        wout_p = jnp.pad(wout, ((0, 0), (0, hid_pad - HID),
                                (0, D_pad - D))).astype(compute_dtype)
        exp_block = jnp.pad(jnp.ones((D,), jnp.float32), (0, D_pad - D))

    # expansion matrix: head h -> ones over its contiguous block of out columns
    expand_core = (jnp.eye(H, dtype=jnp.float32)[:, :, None]
                   * exp_block[None, None, :]).reshape(H, -1)
    expand = jnp.zeros((H, OUTW), compute_dtype).at[
        :, :expand_core.shape[1]].set(expand_core.astype(compute_dtype))

    packed = dict(scale=scale, wr=wr_p, centT=centT, chalf=chalf,
                  win=win_p, wout=wout_p, expand=expand)
    meta = dict(fused=fused, H=H, D=D, HID=HID, hid_pad=hid_pad,
                compute_dtype=jnp.dtype(compute_dtype))
    return packed, meta


def sparse_query_forward(x, packed, meta, *, top_k, tm=256):
    B, S, F = x.shape
    H, D = meta["H"], meta["D"]
    fused = meta["fused"]
    cdt = meta["compute_dtype"]
    top_k = min(top_k, H)
    exact = cdt == jnp.dtype(jnp.float32)

    F_pad = packed["wr"].shape[0]
    OUTW = packed["expand"].shape[1]
    T = B * S

    # token tile: big for MXU row occupancy, clipped for tiny inputs; for large
    # inputs keep >= 2 grid steps so both v7x TensorCores get work.
    tm = max(8, min(tm, _round_up(T, 8)))
    if T > 256 and _round_up(T, tm) // tm < 2:
        tm = _round_up((T + 1) // 2, 8)
    T_pad = _round_up(T, tm)

    x2 = x.reshape(T, F).astype(cdt)
    if T_pad != T or F_pad != F:                 # skip repack when aligned
        x2 = jnp.zeros((T_pad, F_pad), cdt).at[:T, :F].set(x2)

    args = (packed["scale"], x2, packed["wr"], packed["centT"], packed["chalf"],
            packed["win"], packed["wout"], packed["expand"])

    def _run(gelu_bf16_flag):
        kernel = partial(sparse_query_kernel, top_k=top_k, exact=exact,
                         gelu_bf16=gelu_bf16_flag, fused=fused,
                         num_heads=H, hid_pad=meta["hid_pad"])
        return pl.pallas_call(
            kernel,
            out_shape=jax.ShapeDtypeStruct((T_pad, OUTW), cdt),
            grid=(T_pad // tm,),
            in_specs=[
                pl.BlockSpec(memory_space=pltpu.MemorySpace.SMEM),   # scale
                pl.BlockSpec((tm, F_pad), lambda i: (i, 0)),         # x tile
                _res_spec(),   # wr        (VMEM resident)
                _res_spec(),   # centT
                _res_spec(),   # c_half
                _res_spec(),   # W_in
                _res_spec(),   # W_out
                _res_spec(),   # expand
            ],
            out_specs=pl.BlockSpec((tm, OUTW), lambda i: (i, 0)),
            compiler_params=pltpu.CompilerParams(
                dimension_semantics=("parallel",),
                vmem_limit_bytes=_vmem_limit_bytes()),
        )(*args)

    if (not exact) and _chip_has_bf16_vpu():
        try:
            out = _run(True)
        except Exception:
            out = _run(False)    # safe fallback: f32 erf-GELU
    else:
        out = _run(False)

    if fused:
        out = out[:T, :H * D]
    else:
        D_pad = OUTW // H
        out = out[:T].reshape(T, H, D_pad)[:, :, :D].reshape(T, H * D)
    # eval-mode aux_loss is 0.0 in the PyTorch module
    return out.reshape(B, S, H * D), 0.0


def reference_forward(x, params, num_heads, head_dim, top_k, route_dtype=None):
    """Pure-JAX reference matching the PyTorch eval forward (f32, HIGHEST).
    route_dtype optionally truncates z before the centroid matmul, mirroring
    the bf16 fast path's routing numerics."""
    hp = jax.lax.Precision.HIGHEST
    B, S, F = x.shape
    G = params["w_router"].shape[1]
    z = jnp.einsum("bsf,fg->bsg", x, params["w_router"], precision=hp)
    zr = z if route_dtype is None else z.astype(route_dtype).astype(jnp.float32)
    cent = params["head_centroids"]
    cross = jnp.einsum("bsg,hg->bsh", zr, cent, precision=hp)
    logits = cross - 0.5 * (jnp.sum(z * z, -1, keepdims=True)
                            + jnp.sum(cent * cent, -1))
    logits = logits / math.sqrt(G) * jnp.exp(params["temperature"])
    probs = jax.nn.softmax(logits, axis=-1)
    tk_p, _ = jax.lax.top_k(probs, top_k)
    gate = jnp.where(probs >= tk_p[..., -1:], probs, 0.0)
    hidden = jnp.einsum("bsi,nid->bsnd", x, params["input_experts"], precision=hp)
    hidden = 0.5 * hidden * (1.0 + jax.lax.erf(hidden / math.sqrt(2.0)))
    outputs = jnp.einsum("bsnd,ndh->bsnh", hidden, params["output_experts"],
                         precision=hp)
    full = outputs * gate[..., None]
    return full.reshape(B, S, num_heads * head_dim)


if __name__ == "__main__":
    def run_case(name, *, B, S, F, H, D, HID, G, top_k, compute_dtype, tol):
        key = jax.random.PRNGKey(0)
        k1, k2, k3, k4, k5 = jax.random.split(key, 5)
        x = jax.random.normal(k1, (B, S, F), dtype=jnp.float32)
        params = {
            "w_router": jax.random.normal(k2, (F, G), jnp.float32) / math.sqrt(F),
            "head_centroids": jax.random.normal(k3, (H, G), jnp.float32),
            "input_experts": jax.random.uniform(k4, (H, F, HID), jnp.float32,
                                                minval=-1.0 / F, maxval=1.0 / F),
            "output_experts": jax.random.uniform(k5, (H, HID, D), jnp.float32,
                                                 minval=-1.0 / HID,
                                                 maxval=1.0 / HID),
            "temperature": jnp.zeros((), jnp.float32),
            # bias=False in this config -> no input_bias / output_bias
        }
        packed, meta = pack_sparse_query_params(
            params, num_heads=H, head_dim=D, compute_dtype=compute_dtype)
        out, aux_loss = sparse_query_forward(x, packed, meta, top_k=top_k)
        out = jax.block_until_ready(out).astype(jnp.float32)

        if compute_dtype == jnp.float32:
            ref = reference_forward(x, params, H, D, top_k)
        else:
            q = lambda a: a.astype(jnp.bfloat16).astype(jnp.float32)
            params_q = {k: q(v) for k, v in params.items()}
            ref = reference_forward(q(x), params_q, H, D, top_k,
                                    route_dtype=jnp.bfloat16)
        assert out.shape == (B, S, H * D), (name, out.shape)
        assert aux_loss == 0.0
        err = float(jnp.max(jnp.abs(out - ref)))
        assert jnp.allclose(out, ref, atol=tol, rtol=tol), \
            f"{name}: max err {err}"

    # fused block-diag path (small H), strict f32 numerics
    run_case("fused_f32", B=2, S=8, F=32, H=4, D=16, HID=16, G=16,
             top_k=2, compute_dtype=jnp.float32, tol=1e-3)
    # fused path, bf16 fast path (bf16 MXU, bf16 GELU on v6e/v7x, bf16 output)
    run_case("fused_bf16", B=2, S=8, F=32, H=4, D=16, HID=16, G=16,
             top_k=2, compute_dtype=jnp.bfloat16, tol=2e-2)
    # per-head path (H > 8): dense per-head W_out dots, strict f32 numerics
    run_case("perhead_f32", B=2, S=8, F=32, H=16, D=8, HID=8, G=8,
             top_k=4, compute_dtype=jnp.float32, tol=1e-3)

    print("KERNEL_OK")
</pallas_src>

<mosaic_0001>
module attributes {stable_mosaic.version = 11 : i64} {
  func.func @sparse_query_kernel(%arg0: i32, %arg1: memref<1x1xf32, #tpu.memory_space<smem>>, %arg2: memref<16x128xf32, #tpu.memory_space<vmem>>, %arg3: memref<128x128xf32, #tpu.memory_space<vmem>>, %arg4: memref<128x4xf32, #tpu.memory_space<vmem>>, %arg5: memref<1x4xf32, #tpu.memory_space<vmem>>, %arg6: memref<128x128xf32, #tpu.memory_space<vmem>>, %arg7: memref<128x128xf32, #tpu.memory_space<vmem>>, %arg8: memref<4x128xf32, #tpu.memory_space<vmem>>, %arg9: memref<16x128xf32, #tpu.memory_space<vmem>>) attributes {dimension_semantics = [#tpu.dimension_semantics<parallel>], iteration_bounds = array<i64: 1>, scalar_prefetch = 0 : i64, scratch_operands = 0 : i64, tpu.core_type = #tpu.core_type<tc>, window_params = [{transform_indices = @transform_0, window_bounds = array<i64: 1, 1>}, {transform_indices = @transform_1, window_bounds = array<i64: 16, 128>}, {pipeline_mode = #tpu.pipeline_mode<synchronous>, transform_indices = @transform_2, window_bounds = array<i64: 128, 128>}, {pipeline_mode = #tpu.pipeline_mode<synchronous>, transform_indices = @transform_3, window_bounds = array<i64: 128, 4>}, {pipeline_mode = #tpu.pipeline_mode<synchronous>, transform_indices = @transform_4, window_bounds = array<i64: 1, 4>}, {pipeline_mode = #tpu.pipeline_mode<synchronous>, transform_indices = @transform_5, window_bounds = array<i64: 128, 128>}, {pipeline_mode = #tpu.pipeline_mode<synchronous>, transform_indices = @transform_6, window_bounds = array<i64: 128, 128>}, {pipeline_mode = #tpu.pipeline_mode<synchronous>, transform_indices = @transform_7, window_bounds = array<i64: 4, 128>}, {transform_indices = @transform_8, window_bounds = array<i64: 16, 128>}]} {
    %c0 = arith.constant 0 : index
    %c0_0 = arith.constant 0 : index
    %0 = vector.load %arg2[%c0, %c0_0] : memref<16x128xf32, #tpu.memory_space<vmem>>, vector<16x128xf32>
    %c0_1 = arith.constant 0 : index
    %c0_2 = arith.constant 0 : index
    %1 = vector.load %arg3[%c0_1, %c0_2] : memref<128x128xf32, #tpu.memory_space<vmem>>, vector<128x128xf32>
    %cst = arith.constant dense<0.000000e+00> : vector<16x128xf32>
    %2 = tpu.matmul %0, %1, %cst {dimension_numbers = #tpu.dot_dimension_numbers<[1], [0], [0], [1], [0, 0, 1, 1], [], []>, precision = #tpu.contract_precision<fp32>} : vector<16x128xf32>, vector<128x128xf32>, vector<16x128xf32> -> vector<16x128xf32>
    %c0_3 = arith.constant 0 : index
    %c0_4 = arith.constant 0 : index
    %3 = vector.load %arg4[%c0_3, %c0_4] : memref<128x4xf32, #tpu.memory_space<vmem>>, vector<128x4xf32>
    %cst_5 = arith.constant dense<0.000000e+00> : vector<16x4xf32>
    %4 = tpu.matmul %2, %3, %cst_5 {dimension_numbers = #tpu.dot_dimension_numbers<[1], [0], [0], [1], [0, 0, 1, 1], [], []>, precision = #tpu.contract_precision<fp32>} : vector<16x128xf32>, vector<128x4xf32>, vector<16x4xf32> -> vector<16x4xf32>
    %5 = arith.mulf %2, %2 : vector<16x128xf32>
    %cst_6 = arith.constant dense<0.000000e+00> : vector<16xf32>
    %6 = vector.multi_reduction <add>, %5, %cst_6 [1] : vector<16x128xf32> to vector<16xf32>
    %7 = vector.shape_cast %6 : vector<16xf32> to vector<16x1xf32>
    %cst_7 = arith.constant 5.000000e-01 : f32
    %8 = vector.broadcast %cst_7 : f32 to vector<16x1xf32>
    %9 = arith.mulf %8, %7 : vector<16x1xf32>
    %10 = vector.broadcast %9 : vector<16x1xf32> to vector<16x4xf32>
    %11 = arith.subf %4, %10 : vector<16x4xf32>
    %c0_8 = arith.constant 0 : index
    %c0_9 = arith.constant 0 : index
    %12 = vector.load %arg5[%c0_8, %c0_9] : memref<1x4xf32, #tpu.memory_space<vmem>>, vector<1x4xf32>
    %13 = vector.broadcast %12 : vector<1x4xf32> to vector<16x4xf32>
    %14 = arith.subf %11, %13 : vector<16x4xf32>
    %c0_10 = arith.constant 0 : index
    %c0_11 = arith.constant 0 : index
    %15 = memref.load %arg1[%c0_10, %c0_11] : memref<1x1xf32, #tpu.memory_space<smem>>
    %16 = vector.broadcast %15 : f32 to vector<16x4xf32>
    %17 = arith.mulf %14, %16 : vector<16x4xf32>
    %cst_12 = arith.constant dense<0xFF800000> : vector<16xf32>
    %18 = vector.multi_reduction <maximumf>, %17, %cst_12 [1] : vector<16x4xf32> to vector<16xf32>
    %19 = vector.shape_cast %18 : vector<16xf32> to vector<16x1xf32>
    %20 = vector.broadcast %19 : vector<16x1xf32> to vector<16x4xf32>
    %21 = arith.subf %17, %20 : vector<16x4xf32>
    %22 = math.exp %21 : vector<16x4xf32>
    %cst_13 = arith.constant dense<0.000000e+00> : vector<16xf32>
    %23 = vector.multi_reduction <add>, %22, %cst_13 [1] : vector<16x4xf32> to vector<16xf32>
    %24 = vector.shape_cast %23 : vector<16xf32> to vector<16x1xf32>
    %25 = vector.broadcast %24 : vector<16x1xf32> to vector<16x4xf32>
    %26 = arith.divf %22, %25 : vector<16x4xf32>
    %27 = tpu.iota {dimensions = array<i32: 1>} : vector<16x4xi32>
    %cst_14 = arith.constant 0.000000e+00 : f32
    %28 = vector.broadcast %cst_14 : f32 to vector<16x4xf32>
    %cst_15 = arith.constant dense<0xFF800000> : vector<16xf32>
    %29 = vector.multi_reduction <maximumf>, %26, %cst_15 [1] : vector<16x4xf32> to vector<16xf32>
    %30 = vector.shape_cast %29 : vector<16xf32> to vector<16x1xf32>
    %31 = vector.broadcast %30 : vector<16x1xf32> to vector<16x4xf32>
    %32 = arith.cmpf oeq, %26, %31 : vector<16x4xf32>
    %c4_i32 = arith.constant 4 : i32
    %33 = vector.broadcast %c4_i32 : i32 to vector<16x4xi32>
    %34 = arith.select %32, %27, %33 : vector<16x4xi1>, vector<16x4xi32>
    %cst_16 = arith.constant dense<2147483647> : vector<16xi32>
    %35 = vector.multi_reduction <minsi>, %34, %cst_16 [1] : vector<16x4xi32> to vector<16xi32>
    %36 = vector.shape_cast %35 : vector<16xi32> to vector<16x1xi32>
    %37 = vector.broadcast %36 : vector<16x1xi32> to vector<16x4xi32>
    %38 = arith.cmpi eq, %27, %37 : vector<16x4xi32>
    %39 = arith.select %38, %26, %28 : vector<16x4xi1>, vector<16x4xf32>
    %cst_17 = arith.constant 0xFF800000 : f32
    %40 = vector.broadcast %cst_17 : f32 to vector<16x4xf32>
    %41 = arith.select %38, %40, %26 : vector<16x4xi1>, vector<16x4xf32>
    %cst_18 = arith.constant dense<0xFF800000> : vector<16xf32>
    %42 = vector.multi_reduction <maximumf>, %41, %cst_18 [1] : vector<16x4xf32> to vector<16xf32>
    %43 = vector.shape_cast %42 : vector<16xf32> to vector<16x1xf32>
    %44 = vector.broadcast %43 : vector<16x1xf32> to vector<16x4xf32>
    %45 = arith.cmpf oeq, %41, %44 : vector<16x4xf32>
    %c4_i32_19 = arith.constant 4 : i32
    %46 = vector.broadcast %c4_i32_19 : i32 to vector<16x4xi32>
    %47 = arith.select %45, %27, %46 : vector<16x4xi1>, vector<16x4xi32>
    %cst_20 = arith.constant dense<2147483647> : vector<16xi32>
    %48 = vector.multi_reduction <minsi>, %47, %cst_20 [1] : vector<16x4xi32> to vector<16xi32>
    %49 = vector.shape_cast %48 : vector<16xi32> to vector<16x1xi32>
    %50 = vector.broadcast %49 : vector<16x1xi32> to vector<16x4xi32>
    %51 = arith.cmpi eq, %27, %50 : vector<16x4xi32>
    %52 = arith.select %51, %26, %39 : vector<16x4xi1>, vector<16x4xf32>
    %c0_21 = arith.constant 0 : index
    %c0_22 = arith.constant 0 : index
    %53 = vector.load %arg8[%c0_21, %c0_22] : memref<4x128xf32, #tpu.memory_space<vmem>>, vector<4x128xf32>
    %cst_23 = arith.constant dense<0.000000e+00> : vector<16x128xf32>
    %54 = tpu.matmul %52, %53, %cst_23 {dimension_numbers = #tpu.dot_dimension_numbers<[1], [0], [0], [1], [0, 0, 1, 1], [], []>, precision = #tpu.contract_precision<fp32>} : vector<16x4xf32>, vector<4x128xf32>, vector<16x128xf32> -> vector<16x128xf32>
    %c0_24 = arith.constant 0 : index
    %c0_25 = arith.constant 0 : index
    %55 = vector.load %arg6[%c0_24, %c0_25] : memref<128x128xf32, #tpu.memory_space<vmem>>, vector<128x128xf32>
    %cst_26 = arith.constant dense<0.000000e+00> : vector<16x128xf32>
    %56 = tpu.matmul %0, %55, %cst_26 {dimension_numbers = #tpu.dot_dimension_numbers<[1], [0], [0], [1], [0, 0, 1, 1], [], []>, precision = #tpu.contract_precision<fp32>} : vector<16x128xf32>, vector<128x128xf32>, vector<16x128xf32> -> vector<16x128xf32>
    %cst_27 = arith.constant 5.000000e-01 : f32
    %57 = vector.broadcast %cst_27 : f32 to vector<16x128xf32>
    %58 = arith.mulf %57, %56 : vector<16x128xf32>
    %cst_28 = arith.constant 0.707106769 : f32
    %59 = vector.broadcast %cst_28 : f32 to vector<16x128xf32>
    %60 = arith.mulf %56, %59 : vector<16x128xf32>
    %61 = math.erf %60 : vector<16x128xf32>
    %cst_29 = arith.constant 1.000000e+00 : f32
    %62 = vector.broadcast %cst_29 : f32 to vector<16x128xf32>
    %63 = arith.addf %62, %61 : vector<16x128xf32>
    %64 = arith.mulf %58, %63 : vector<16x128xf32>
    %c0_30 = arith.constant 0 : index
    %c0_31 = arith.constant 0 : index
    %65 = vector.load %arg7[%c0_30, %c0_31] : memref<128x128xf32, #tpu.memory_space<vmem>>, vector<128x128xf32>
    %cst_32 = arith.constant dense<0.000000e+00> : vector<16x128xf32>
    %66 = tpu.matmul %64, %65, %cst_32 {dimension_numbers = #tpu.dot_dimension_numbers<[1], [0], [0], [1], [0, 0, 1, 1], [], []>, precision = #tpu.contract_precision<fp32>} : vector<16x128xf32>, vector<128x128xf32>, vector<16x128xf32> -> vector<16x128xf32>
    %67 = arith.mulf %66, %54 : vector<16x128xf32>
    %c0_33 = arith.constant 0 : index
    %c0_34 = arith.constant 0 : index
    %68 = vector.load %arg9[%c0_33, %c0_34] : memref<16x128xf32, #tpu.memory_space<vmem>>, vector<16x128xf32>
    tpu.vector_store %arg9[%c0_33, %c0_34], %67 {strides = array<i32>} : memref<16x128xf32, #tpu.memory_space<vmem>>, vector<16x128xf32>,
    return
  }
  func.func @transform_0(%arg0: i32) -> (i32, i32) {
    %c0_i32 = arith.constant 0 : i32
    %c0_i32_0 = arith.constant 0 : i32
    %c0_i32_1 = arith.constant 0 : i32
    return %c0_i32, %c0_i32_0 : i32, i32
  }
  func.func @transform_1(%arg0: i32) -> (i32, i32) {
    %c0_i32 = arith.constant 0 : i32
    %c0_i32_0 = arith.constant 0 : i32
    return %arg0, %c0_i32 : i32, i32
  }
  func.func @transform_2(%arg0: i32) -> (i32, i32) {
    %c0_i32 = arith.constant 0 : i32
    %c0_i32_0 = arith.constant 0 : i32
    %c0_i32_1 = arith.constant 0 : i32
    return %c0_i32, %c0_i32_0 : i32, i32
  }
  func.func @transform_3(%arg0: i32) -> (i32, i32) {
    %c0_i32 = arith.constant 0 : i32
    %c0_i32_0 = arith.constant 0 : i32
    %c0_i32_1 = arith.constant 0 : i32
    return %c0_i32, %c0_i32_0 : i32, i32
  }
  func.func @transform_4(%arg0: i32) -> (i32, i32) {
    %c0_i32 = arith.constant 0 : i32
    %c0_i32_0 = arith.constant 0 : i32
    %c0_i32_1 = arith.constant 0 : i32
    return %c0_i32, %c0_i32_0 : i32, i32
  }
  func.func @transform_5(%arg0: i32) -> (i32, i32) {
    %c0_i32 = arith.constant 0 : i32
    %c0_i32_0 = arith.constant 0 : i32
    %c0_i32_1 = arith.constant 0 : i32
    return %c0_i32, %c0_i32_0 : i32, i32
  }
  func.func @transform_6(%arg0: i32) -> (i32, i32) {
    %c0_i32 = arith.constant 0 : i32
    %c0_i32_0 = arith.constant 0 : i32
    %c0_i32_1 = arith.constant 0 : i32
    return %c0_i32, %c0_i32_0 : i32, i32
  }
  func.func @transform_7(%arg0: i32) -> (i32, i32) {
    %c0_i32 = arith.constant 0 : i32
    %c0_i32_0 = arith.constant 0 : i32
    %c0_i32_1 = arith.constant 0 : i32
    return %c0_i32, %c0_i32_0 : i32, i32
  }
  func.func @transform_8(%arg0: i32) -> (i32, i32) {
    %c0_i32 = arith.constant 0 : i32
    %c0_i32_0 = arith.constant 0 : i32
    return %arg0, %c0_i32 : i32, i32
  }
}

</mosaic_0001>

<bundles_post_ra>
// kernel: tpu_custom_call.1
= control target key start
LH: loop header
LB: loop body
LE: loop exit
PB: predicated region body
PF: predicated region fallthrough
CT: control target
= control target key end

     0   :  { %14 = vsyncpa [#allocation4], 0  ;;  %s6613_s0 = inlined_call_operand.<no memory space> [shape: f32[1,1], index: 0, kind: input, shape index: {}]   ;;  %s6614_s1 = inlined_call_operand.hbm [shape: f32[16,128], index: 1, kind: input, shape index: {}]   ;;  %s6615_s2 = inlined_call_operand.vmem [shape: f32[128,128], index: 2, kind: input, shape index: {}]   ;;  %s6616_s3 = inlined_call_operand.vmem [shape: f32[128,4], index: 3, kind: input, shape index: {}]   ;;  %s6617_s4 = inlined_call_operand.vmem [shape: f32[1,4], index: 4, kind: input, shape index: {}]   ;;  %s6618_s5 = inlined_call_operand.hbm [shape: f32[128,128], index: 5, kind: input, shape index: {}]   ;;  %s6619_s6 = inlined_call_operand.hbm [shape: f32[128,128], index: 6, kind: input, shape index: {}]   ;;  %s6620_s7 = inlined_call_operand.vmem [shape: f32[4,128], index: 7, kind: input, shape index: {}]   ;;  %s6621_s8 = inlined_call_operand.hbm [shape: f32[16,128], index: 8, kind: output, shape index: {}]  }
   0x1   :  { %15 = vsyncpa [#allocation7], 0 }
   0x2   :  { %16 = vsyncpa [#allocation5], 0  ;;  %s4969_s27 = smov [#allocation6]   ;;  %s4970_s29 = smov [#allocation3]  }
   0x3   :  { %s42_s28 = sshll.u32 %s4969_s27, 4  ;;  %s24_s30 = sshll.u32 %s4970_s29, 4  ;;  %s43_s28 = int_to_ptr.vmem [resolvable:$true] %s42_s28  ;;  %s25_s30 = int_to_ptr.vmem [resolvable:$true] %s24_s30 }
   0x4   :  { %s4891_s9 = scalar_lea.vmem %s43_s28, 2048  ;;  %p4896_p1 = scmp.lt.s32.totalorder %s43_s28, %s43_s28 }
   0x5   :  { %p4892_p0 = scmp.ne.s32.totalorder %s43_s28, %s4891_s9  ;;  %p4897_p2 = scmp.lt.s32.totalorder %s4891_s9, %s4891_s9 }
   0x7   :  { %p4898_p3 = por %p4897_p2, %p4896_p1 }
   0x9   :  { %p4899_p4 = pnand %p4898_p3, %p4892_p0 }
   0xb   :  { %4902 = shalt.err (!%p4899_p4)
}
   0xc   :  { %s4971_s10 = smov 128   ;;  %s4972_s11 = smov 8  }
   0xd   :  { %48 = dma.hbm_to_vmem [thread:$0]  %s6618_s5, 2048, %s43_s28, [#allocation7], %s4971_s10, %s4971_s10, %s4972_s11  }
   0xe   :  { %s4911_s14 = scalar_lea.vmem %s25_s30, 256  ;;  %p4916_p6 = scmp.lt.s32.totalorder %s25_s30, %s25_s30 }
   0xf   :  { %p4912_p5 = scmp.ne.s32.totalorder %s25_s30, %s4911_s14  ;;  %p4917_p7 = scmp.lt.s32.totalorder %s4911_s14, %s4911_s14 }
  0x11   :  { %p4918_p8 = por %p4917_p7, %p4916_p6 }
  0x13   :  { %p4919_p9 = pnand %p4918_p8, %p4912_p5 }
  0x15   :  { %4922 = shalt.err (!%p4919_p9)
}
  0x16   :  { %30 = dma.hbm_to_vmem [thread:$0]  %s6614_s1, 256, %s25_s30, [#allocation4], %s4971_s10, %s4971_s10, %s4972_s11  }
  0x17   :  { %s4973_s17 = smov [#allocation8]  }
  0x18   :  { %s54_s18 = sshll.u32 %s4973_s17, 4  ;;  %s55_s18 = int_to_ptr.vmem [resolvable:$true] %s54_s18 }
  0x19   :  { %s4931_s19 = scalar_lea.vmem %s55_s18, 2048  ;;  %p4936_p11 = scmp.lt.s32.totalorder %s55_s18, %s55_s18 }
  0x1a   :  { %p4932_p10 = scmp.ne.s32.totalorder %s55_s18, %s4931_s19  ;;  %p4937_p12 = scmp.lt.s32.totalorder %s4931_s19, %s4931_s19 }
  0x1c   :  { %p4938_p13 = por %p4937_p12, %p4936_p11 }
  0x1e   :  { %p4939_p0 = pnand %p4938_p13, %p4932_p10 }
  0x20   :  { %4942 = shalt.err (!%p4939_p0)
}
  0x21   :  { %60 = dma.hbm_to_vmem [thread:$0]  %s6619_s6, 2048, %s55_s18, [#allocation7], %s4971_s10, %s4971_s10, %s4972_s11  }
  0x22   :  { %4963 = dma.done.wait [#allocation4], 256  }
  0x23   :  { %4964 = vsyncadd [#allocation4], 4294967040 }
  0x24   :  { %4965 = dma.done.wait [#allocation7], 4096  }
  0x25   :  { %4966 = vsyncadd [#allocation7], 4294963200  ;;  %v89_v0 = vld [vmem:[%s6615_s2 + $0x78] sm:$0xff]  ;;  %v88_v1 = vld [vmem:[%s6615_s2 + $0x70] sm:$0xff]  ;;  %vm1497_vm0 = vcmask 31744   ;;  %vm1619_vm11 = vcmask 1043456  }
  0x26   :  { %v87_v2 = vld [vmem:[%s6615_s2 + $0x68] sm:$0xff]  ;;  %v5047_v3 = vand.u32 4294901760, %v89_v0  ;;  %v5049_v4 = vand.u32 4294901760, %v88_v1  ;;  %v86_v6 = vld [vmem:[%s6615_s2 + $0x60] sm:$0xff]  ;;  %v85_v7 = vld [vmem:[%s6615_s2 + $0x58] sm:$0xff] }
  0x27   :  { %v5051_v5 = vand.u32 4294901760, %v87_v2  ;;  %v84_v8 = vld [vmem:[%s6615_s2 + $0x50] sm:$0xff]  ;;  %v5062_v9 = vand.u32 4294901760, %v86_v6  ;;  %v5064_v10 = vand.u32 4294901760, %v85_v7  ;;  %v83_v12 = vld [vmem:[%s6615_s2 + $0x48] sm:$0xff]  ;;  %v82_v13 = vld [vmem:[%s6615_s2 + $0x40] sm:$0xff] }
  0x28   :  { %v5066_v11 = vand.u32 4294901760, %v84_v8  ;;  %3995 = vmatprep.subr.mxu0 %v5047_v3  ;;  %v5076_v14 = vsub.f32 %v89_v0, %v5047_v3  ;;  %v5079_v15 = vsub.f32 %v88_v1, %v5049_v4  ;;  %v5081_v16 = vand.u32 4294901760, %v83_v12  ;;  %v81_v18 = vld [vmem:[%s6615_s2 + $0x38] sm:$0xff]  ;;  %v80_v25 = vld [vmem:[%s6615_s2 + $0x30] sm:$0xff]  ;;  %v79_v35 = vld [vmem:[%s6615_s2 + $0x28] sm:$0xff] }
  0x29   :  { %v5084_v17 = vsub.f32 %v87_v2, %v5051_v5  ;;  %3996 = vmatpush3.msra.mxu0 %v5047_v3  ;;  %v5091_v19 = vsub.f32 %v86_v6, %v5062_v9  ;;  %v5094_v20 = vsub.f32 %v85_v7, %v5064_v10  ;;  %v5106_v24 = vand.u32 4294901760, %v82_v13  ;;  %v78_v40 = vld [vmem:[%s6615_s2 + $0x20] sm:$0xff]  ;;  %v77_v48 = vld [vmem:[%s6615_s2 + $0x18] sm:$0xff]  ;;  %v73_v54 = vld [vmem:[#allocation3 + $0x8] sm:$0xff] }
  0x2a   :  { %3997 = vmatprep.subr.mxu0 %v5049_v4  ;;  %v5098_v21 = vand.u32 4294901760, %v5076_v14  ;;  %v5101_v22 = vand.u32 4294901760, %v5079_v15  ;;  %v5115_v27 = vand.u32 4294901760, %v81_v18  ;;  %v5121_v29 = vsub.f32 %v84_v8, %v5066_v11  ;;  %v72_v49 = vld [vmem:[#allocation3] sm:$0xff]  ;;  %v76_v59 = vld [vmem:[%s6615_s2 + $0x10] sm:$0xff]  ;;  %v75_v2 = vld [vmem:[%s6615_s2 + $0x8] sm:$0xff] }
  0x2b   :  { %v5104_v23 = vand.u32 4294901760, %v5084_v17  ;;  %3998 = vmatpush3.msra.mxu0 %v5049_v4  ;;  %v5113_v26 = vand.u32 4294901760, %v5091_v19  ;;  %v5118_v28 = vand.u32 4294901760, %v5094_v20  ;;  %v5131_v33 = vsub.f32 %v83_v12, %v5081_v16 }
  0x2c   :  { %3999 = vmatprep.subr.mxu0 %v5051_v5  ;;  %v195_v30 = vsub.f32 %v5076_v14, %v5098_v21  ;;  %v202_v31 = vsub.f32 %v5079_v15, %v5101_v22  ;;  %v5134_v34 = vand.u32 4294901760, %v80_v25  ;;  %v5143_v39 = vand.u32 4294901760, %v5121_v29 }
  0x2d   :  { %v209_v32 = vsub.f32 %v5084_v17, %v5104_v23  ;;  %4000 = vmatpush3.msra.mxu0 %v5051_v5  ;;  %v216_v38 = vsub.f32 %v5091_v19, %v5113_v26  ;;  %v223_v41 = vsub.f32 %v5094_v20, %v5118_v28  ;;  %v5152_v42 = vand.u32 4294901760, %v5131_v33 }
  0x2e   :  { %4001 = vmatprep.subr.mxu0 %v5062_v9  ;;  %v196_v36 = vand.u32 4294901760, %v195_v30  ;;  %v203_v37 = vand.u32 4294901760, %v202_v31  ;;  %v5155_v43 = vsub.f32 %v82_v13, %v5106_v24  ;;  %v5158_v45 = vand.u32 4294901760, %v79_v35 }
  0x2f   :  { %4002 = vmatpush3.msra.mxu0 %v5062_v9  ;;  %v210_v44 = vand.u32 4294901760, %v209_v32  ;;  %v5161_v46 = vsub.f32 %v81_v18, %v5115_v27  ;;  %v5164_v47 = vand.u32 4294901760, %v78_v40  ;;  %v217_v50 = vand.u32 4294901760, %v216_v38  ;;  %v74_v18 = vld [vmem:[%s6615_s2] sm:$0xff] }
  0x30   :  { %4003 = vmatprep.subr.mxu0 %v5064_v10  ;;  %4030 = vmatprep.subr.mxu1 %v196_v36  ;;  %v230_v51 = vsub.f32 %v5121_v29, %v5143_v39  ;;  %v5173_v52 = vand.u32 4294901760, %v5155_v43  ;;  %v5176_v53 = vsub.f32 %v80_v25, %v5134_v34  ;;  %v224_v55 = vand.u32 4294901760, %v223_v41 }
  0x31   :  { %4004 = vmatpush3.msra.mxu0 %v5064_v10  ;;  %4031 = vmatpush3.msra.mxu1 %v196_v36  ;;  %v237_v56 = vsub.f32 %v5131_v33, %v5152_v42  ;;  %v5182_v57 = vand.u32 4294901760, %v77_v48  ;;  %v5185_v58 = vand.u32 4294901760, %v5161_v46  ;;  %v5191_v60 = vsub.f32 %v79_v35, %v5158_v45 }
  0x32   :  { %4005 = vmatprep.subr.mxu0 %v5066_v11  ;;  %4032 = vmatprep.subr.mxu1 %v203_v37  ;;  %v5193_v61 = vand.u32 4294901760, %v72_v49  ;;  %v5196_v62 = vand.u32 4294901760, %v73_v54  ;;  %v231_v63 = vand.u32 4294901760, %v230_v51  ;;  %v244_v0 = vsub.f32 %v5155_v43, %v5173_v52 }
  0x33   :  { %4006 = vmatpush3.msra.mxu0 %v5066_v11  ;;  %4033 = vmatpush3.msra.mxu1 %v203_v37  ;;  %v5202_v1 = vand.u32 4294901760, %v5176_v53  ;;  %v5208_v6 = vsub.f32 %v78_v40, %v5164_v47  ;;  %v238_v7 = vand.u32 4294901760, %v237_v56  ;;  %v5211_v8 = vand.u32 4294901760, %v76_v59 }
  0x34   :  { %4007 = vmatprep.subr.mxu0 %v5081_v16  ;;  %4034 = vmatprep.subr.mxu1 %v210_v44  ;;  %6666 = vst [vmem:[#allocation13_spill] sm:$0xff] %v5193_v61  ;;  %6667 = vst [vmem:[#allocation14_spill] sm:$0xff] %v5196_v62  ;;  %v251_v12 = vsub.f32 %v5161_v46, %v5185_v58  ;;  %v5217_v13 = vand.u32 4294901760, %v5191_v60  ;;  %v5223_v25 = vsub.f32 %v72_v49, %v5193_v61 }
  0x35   :  { %4008 = vmatpush3.msra.mxu0 %v5081_v16  ;;  %4035 = vmatpush3.msra.mxu1 %v210_v44  ;;  %v5226_v30 = vsub.f32 %v77_v48, %v5182_v57  ;;  %v5229_v31 = vand.u32 4294901760, %v75_v2  ;;  %v5232_v32 = vsub.f32 %v73_v54, %v5196_v62  ;;  %v245_v35 = vand.u32 4294901760, %v244_v0 }
  0x36   :  { %4009 = vmatprep.subr.mxu0 %v5106_v24  ;;  %4036 = vmatprep.subr.mxu1 %v217_v50  ;;  %6668 = vst [vmem:[#allocation15_spill] sm:$0xff] %v5223_v25  ;;  %v258_v36 = vsub.f32 %v5176_v53, %v5202_v1  ;;  %v5238_v37 = vand.u32 4294901760, %v5208_v6  ;;  %v5241_v38 = vand.u32 4294901760, %v74_v18  ;;  %v5244_v40 = vsub.f32 %v76_v59, %v5211_v8 }
  0x37   :  { %4010 = vmatpush3.msra.mxu0 %v5106_v24  ;;  %4037 = vmatpush3.msra.mxu1 %v217_v50  ;;  %6669 = vst [vmem:[#allocation16_spill] sm:$0xff] %v5232_v32  ;;  %v252_v41 = vand.u32 4294901760, %v251_v12  ;;  %v265_v44 = vsub.f32 %v5191_v60, %v5217_v13  ;;  %v5250_v48 = vand.u32 4294901760, %v5223_v25  ;;  %v5253_v49 = vand.u32 4294901760, %v5226_v30 }
  0x38   :  { %4011 = vmatprep.subr.mxu0 %v5115_v27  ;;  %4038 = vmatprep.subr.mxu1 %v224_v55  ;;  %v5257_v50 = vand.u32 4294901760, %v5232_v32  ;;  %v5260_v51 = vsub.f32 %v75_v2, %v5229_v31  ;;  %v259_v54 = vand.u32 4294901760, %v258_v36  ;;  %v5267_v56 = vand.u32 4294901760, %v5244_v40 }
  0x39   :  { %4012 = vmatpush3.msra.mxu0 %v5115_v27  ;;  %4039 = vmatpush3.msra.mxu1 %v224_v55  ;;  %6670 = vst [vmem:[#allocation17_spill] sm:$0xff] %v5250_v48  ;;  %6671 = vst [vmem:[#allocation18_spill] sm:$0xff] %v5253_v49  ;;  %v272_v55 = vsub.f32 %v5208_v6, %v5238_v37  ;;  %v5270_v59 = vsub.f32 %v74_v18, %v5241_v38 }
  0x3a   :  { %4013 = vmatprep.subr.mxu0 %v5134_v34  ;;  %4040 = vmatprep.subr.mxu1 %v231_v63  ;;  %6672 = vst [vmem:[#allocation19_spill] sm:$0xff] %v5257_v50  ;;  %v174_v0 = vsub.f32 %v5223_v25, %v5250_v48  ;;  %v279_v2 = vsub.f32 %v5226_v30, %v5253_v49  ;;  %v5281_v12 = vand.u32 4294901760, %v5260_v51 }
  0x3b   :  { %4014 = vmatpush3.msra.mxu0 %v5134_v34  ;;  %4041 = vmatpush3.msra.mxu1 %v231_v63  ;;  %v266_v63 = vand.u32 4294901760, %v265_v44  ;;  %v273_v18 = vand.u32 4294901760, %v272_v55  ;;  %v5288_v36 = vand.u32 4294901760, %v5270_v59 }
  0x3c   :  { %4015 = vmatprep.subr.mxu0 %v5158_v45  ;;  %4042 = vmatprep.subr.mxu1 %v238_v7  ;;  %v280_v44 = vand.u32 4294901760, %v279_v2 }
  0x3d   :  { %4016 = vmatpush3.msra.mxu0 %v5158_v45  ;;  %4043 = vmatpush3.msra.mxu1 %v238_v7  ;;  %v184_v7 = vsub.f32 %v5232_v32, %v5257_v50 }
  0x3e   :  { %4017 = vmatprep.subr.mxu0 %v5164_v47  ;;  %4044 = vmatprep.subr.mxu1 %v245_v35 }
  0x3f   :  { %4018 = vmatpush3.msra.mxu0 %v5164_v47  ;;  %4045 = vmatpush3.msra.mxu1 %v245_v35  ;;  %v286_v35 = vsub.f32 %v5244_v40, %v5267_v56  ;;  %v5294_v49 = vand.u32 4294901760, %v184_v7 }
  0x40   :  { %4019 = vmatprep.subr.mxu0 %v5182_v57  ;;  %4046 = vmatprep.subr.mxu1 %v252_v41 }
  0x41   :  { %4020 = vmatpush3.msra.mxu0 %v5182_v57  ;;  %4047 = vmatpush3.msra.mxu1 %v252_v41  ;;  %v5291_v41 = vand.u32 4294901760, %v174_v0  ;;  %6674 = vst [vmem:[#allocation21_spill] sm:$0xff] %v5294_v49  ;;  %v287_v55 = vand.u32 4294901760, %v286_v35  ;;  %v300_v0 = vsub.f32 %v5270_v59, %v5288_v36 }
  0x42   :  { %4021 = vmatprep.subr.mxu0 %v5211_v8  ;;  %4048 = vmatprep.subr.mxu1 %v259_v54 }
  0x43   :  { %4022 = vmatpush3.msra.mxu0 %v5211_v8  ;;  %4049 = vmatpush3.msra.mxu1 %v259_v54  ;;  %6673 = vst [vmem:[#allocation20_spill] sm:$0xff] %v5291_v41  ;;  %v293_v54 = vsub.f32 %v5260_v51, %v5281_v12  ;;  %v301_v2 = vand.u32 4294901760, %v300_v0 }
  0x44   :  { %4023 = vmatprep.subr.mxu0 %v5229_v31  ;;  %4050 = vmatprep.subr.mxu1 %v266_v63 }
  0x45   :  { %4024 = vmatpush3.msra.mxu0 %v5229_v31  ;;  %4051 = vmatpush3.msra.mxu1 %v266_v63  ;;  %v294_v63 = vand.u32 4294901760, %v293_v54  ;;  %v780_v54 = vld [vmem:[%s6616_s3 + $0x30] sm:$0xff] }
  0x46   :  { %4025 = vmatprep.subr.mxu0 %v5241_v38  ;;  %4052 = vmatprep.subr.mxu1 %v273_v18 }
  0x47   :  { %4026 = vmatpush3.msra.mxu0 %v5241_v38  ;;  %4053 = vmatpush3.msra.mxu1 %v273_v18 }
  0x48   :  { %4027 = vmatprep.mubr.f32.mxu0 %v5291_v41  ;;  %4054 = vmatprep.subr.mxu1 %v280_v44 }
  0x49   :  { %4065 = vmatprep.subr.mxu0 %v5076_v14  ;;  %4028 = vmatmul.mubr.f32.vlgmr.msra.gmra.mxu0 %v5294_v49 }
  0x4a   :  { %4055 = vmatpush3.msra.mxu1 %v280_v44  ;;  %4066 = vmatpush3.msra.mxu0 %v5076_v14  ;;  %v787_v14 = vld [vmem:[%s6616_s3 + $0x68] sm:$0xff] }
  0x4b   :  { %4056 = vmatprep.subr.mxu1 %v287_v55  ;;  %4067 = vmatprep.subr.mxu0 %v5079_v15 }
  0x4c   :  { %4057 = vmatpush3.msra.mxu1 %v287_v55  ;;  %4068 = vmatpush3.msra.mxu0 %v5079_v15 }
  0x4d   :  { %4058 = vmatprep.subr.mxu1 %v294_v63  ;;  %4069 = vmatprep.subr.mxu0 %v5084_v17 }
  0x4e   :  { %4059 = vmatpush3.msra.mxu1 %v294_v63  ;;  %4070 = vmatpush3.msra.mxu0 %v5084_v17  ;;  %v5466_v17 = vand.u32 4294901760, %v787_v14  ;;  %v5578_v63 = vand.u32 4294901760, %v780_v54 }
  0x4f   :  { %4060 = vmatprep.subr.mxu1 %v301_v2  ;;  %4071 = vmatprep.subr.mxu0 %v5091_v19 }
  0x50   :  { %4061 = vmatpush3.msra.mxu1 %v301_v2  ;;  %4062 = vmatprep.mubr.f32.mxu1 %v5193_v61  ;;  %v779_v2 = vld [vmem:[%s6616_s3 + $0x28] sm:$0xff] }
  0x51   :  { %4072 = vmatpush3.msra.mxu0 %v5091_v19  ;;  %4063 = vmatmul.mubr.f32.vlgmr.msra.gmra.mxu1 %v5196_v62  ;;  %v786_v19 = vld [vmem:[%s6616_s3 + $0x60] sm:$0xff] }
  0x52   :  { %4073 = vmatprep.subr.mxu0 %v5094_v20  ;;  %4100 = vmatprep.subr.mxu1 %v5047_v3 }
  0x53   :  { %4074 = vmatpush3.msra.mxu0 %v5094_v20  ;;  %4101 = vmatpush3.msra.mxu1 %v5047_v3  ;;  %v785_v20 = vld [vmem:[%s6616_s3 + $0x58] sm:$0xff] }
  0x54   :  { %4075 = vmatprep.subr.mxu0 %v5121_v29  ;;  %4102 = vmatprep.subr.mxu1 %v5049_v4 }
  0x55   :  { %4076 = vmatpush3.msra.mxu0 %v5121_v29  ;;  %4103 = vmatpush3.msra.mxu1 %v5049_v4 }
  0x56   :  { %4077 = vmatprep.subr.mxu0 %v5131_v33  ;;  %4104 = vmatprep.subr.mxu1 %v5051_v5 }
  0x57   :  { %4078 = vmatpush3.msra.mxu0 %v5131_v33  ;;  %4105 = vmatpush3.msra.mxu1 %v5051_v5  ;;  %v5497_v33 = vsub.f32 %v787_v14, %v5466_v17  ;;  %v778_v14 = vld [vmem:[%s6616_s3 + $0x20] sm:$0xff] }
  0x58   :  { %4079 = vmatprep.subr.mxu0 %v5155_v43  ;;  %4106 = vmatprep.subr.mxu1 %v5062_v9 }
  0x59   :  { %4080 = vmatpush3.msra.mxu0 %v5155_v43  ;;  %4107 = vmatpush3.msra.mxu1 %v5062_v9 }
  0x5a   :  { %4081 = vmatprep.subr.mxu0 %v5161_v46  ;;  %4108 = vmatprep.subr.mxu1 %v5064_v10 }
  0x5b   :  { %4082 = vmatpush3.msra.mxu0 %v5161_v46  ;;  %4109 = vmatpush3.msra.mxu1 %v5064_v10  ;;  %v781_v46 = vld [vmem:[%s6616_s3 + $0x38] sm:$0xff] }
  0x5c   :  { %4083 = vmatprep.subr.mxu0 %v5176_v53  ;;  %4110 = vmatprep.subr.mxu1 %v5066_v11 }
  0x5d   :  { %4084 = vmatpush3.msra.mxu0 %v5176_v53  ;;  %4111 = vmatpush3.msra.mxu1 %v5066_v11  ;;  %v5520_v53 = vand.u32 4294901760, %v5497_v33 }
  0x5e   :  { %4085 = vmatprep.subr.mxu0 %v5191_v60  ;;  %4112 = vmatprep.subr.mxu1 %v5081_v16 }
  0x5f   :  { %4086 = vmatpush3.msra.mxu0 %v5191_v60  ;;  %4113 = vmatpush3.msra.mxu1 %v5081_v16 }
  0x60   :  { %4087 = vmatprep.subr.mxu0 %v5208_v6  ;;  %4114 = vmatprep.subr.mxu1 %v5106_v24 }
  0x61   :  { %4088 = vmatpush3.msra.mxu0 %v5208_v6  ;;  %4115 = vmatpush3.msra.mxu1 %v5106_v24 }
  0x62   :  { %4089 = vmatprep.subr.mxu0 %v5226_v30  ;;  %4116 = vmatprep.subr.mxu1 %v5115_v27 }
  0x63   :  { %4090 = vmatpush3.msra.mxu0 %v5226_v30  ;;  %4117 = vmatpush3.msra.mxu1 %v5115_v27 }
  0x64   :  { %4091 = vmatprep.subr.mxu0 %v5244_v40  ;;  %4118 = vmatprep.subr.mxu1 %v5134_v34 }
  0x65   :  { %4092 = vmatpush3.msra.mxu0 %v5244_v40  ;;  %4119 = vmatpush3.msra.mxu1 %v5134_v34 }
  0x66   :  { %4093 = vmatprep.subr.mxu0 %v5260_v51  ;;  %4120 = vmatprep.subr.mxu1 %v5158_v45 }
  0x67   :  { %4094 = vmatpush3.msra.mxu0 %v5260_v51  ;;  %4121 = vmatpush3.msra.mxu1 %v5158_v45 }
  0x68   :  { %4095 = vmatprep.subr.mxu0 %v5270_v59  ;;  %4122 = vmatprep.subr.mxu1 %v5164_v47 }
  0x69   :  { %4096 = vmatpush3.msra.mxu0 %v5270_v59  ;;  %4097 = vmatprep.mubr.f32.mxu0 %v5223_v25 }
  0x6a   :  { %4123 = vmatpush3.msra.mxu1 %v5164_v47  ;;  %4098 = vmatmul.mubr.f32.vlgmr.msra.gmra.mxu0 %v5232_v32 }
  0x6b   :  { %4124 = vmatprep.subr.mxu1 %v5182_v57  ;;  %4135 = vmatprep.subr.mxu0 %v5098_v21 }
  0x6c   :  { %4125 = vmatpush3.msra.mxu1 %v5182_v57  ;;  %4136 = vmatpush3.msra.mxu0 %v5098_v21  ;;  %v784_v21 = vld [vmem:[%s6616_s3 + $0x50] sm:$0xff] }
  0x6d   :  { %4126 = vmatprep.subr.mxu1 %v5211_v8  ;;  %4137 = vmatprep.subr.mxu0 %v5101_v22 }
  0x6e   :  { %4127 = vmatpush3.msra.mxu1 %v5211_v8  ;;  %4138 = vmatpush3.msra.mxu0 %v5101_v22  ;;  %v5478_v22 = vand.u32 4294901760, %v786_v19 }
  0x6f   :  { %4128 = vmatprep.subr.mxu1 %v5229_v31  ;;  %4139 = vmatprep.subr.mxu0 %v5104_v23 }
  0x70   :  { %4129 = vmatpush3.msra.mxu1 %v5229_v31  ;;  %4140 = vmatpush3.msra.mxu0 %v5104_v23  ;;  %v5480_v23 = vand.u32 4294901760, %v785_v20 }
  0x71   :  { %4130 = vmatprep.subr.mxu1 %v5241_v38  ;;  %4141 = vmatprep.subr.mxu0 %v5113_v26 }
  0x72   :  { %4131 = vmatpush3.msra.mxu1 %v5241_v38  ;;  %4132 = vmatprep.mubr.f32.mxu1 %v5250_v48 }
  0x73   :  { %4142 = vmatpush3.msra.mxu0 %v5113_v26  ;;  %4133 = vmatmul.mubr.f32.vlgmr.msra.gmra.mxu1 %v5257_v50  ;;  %v783_v26 = vld [vmem:[%s6616_s3 + $0x48] sm:$0xff] }
  0x74   :  { %4143 = vmatprep.subr.mxu0 %v5118_v28  ;;  %4170 = vmatprep.subr.mxu1 %v5047_v3 }
  0x75   :  { %4144 = vmatpush3.msra.mxu0 %v5118_v28  ;;  %4171 = vmatpush3.msra.mxu1 %v5047_v3  ;;  %v6675_v3 = vld [vmem:[#allocation18_spill] sm:$0xff] }
  0x76   :  { %4145 = vmatprep.subr.mxu0 %v5143_v39  ;;  %4172 = vmatprep.subr.mxu1 %v5049_v4 }
  0x77   :  { %4146 = vmatpush3.msra.mxu0 %v5143_v39  ;;  %4173 = vmatpush3.msra.mxu1 %v5049_v4  ;;  %v789_v4 = vld [vmem:[%s6616_s3 + $0x78] sm:$0xff]  ;;  %v5503_v39 = vsub.f32 %v786_v19, %v5478_v22 }
  0x78   :  { %4147 = vmatprep.subr.mxu0 %v5152_v42  ;;  %4174 = vmatprep.subr.mxu1 %v5051_v5 }
  0x79   :  { %4148 = vmatpush3.msra.mxu0 %v5152_v42  ;;  %4175 = vmatpush3.msra.mxu1 %v5051_v5  ;;  %v5445_v5 = vand.u32 4294901760, %v789_v4  ;;  %v5506_v42 = vsub.f32 %v785_v20, %v5480_v23 }
  0x7a   :  { %4149 = vmatprep.subr.mxu0 %v5173_v52  ;;  %4176 = vmatprep.subr.mxu1 %v5062_v9 }
  0x7b   :  { %4150 = vmatpush3.msra.mxu0 %v5173_v52  ;;  %4177 = vmatpush3.msra.mxu1 %v5062_v9  ;;  %v788_v9 = vld [vmem:[%s6616_s3 + $0x70] sm:$0xff]  ;;  %v5530_v60 = vand.u32 4294901760, %v5506_v42 }
  0x7c   :  { %4151 = vmatprep.subr.mxu0 %v5185_v58  ;;  %4178 = vmatprep.subr.mxu1 %v5064_v10 }
  0x7d   :  { %4152 = vmatpush3.msra.mxu0 %v5185_v58  ;;  %4179 = vmatpush3.msra.mxu1 %v5064_v10  ;;  %v5451_v10 = vsub.f32 %v789_v4, %v5445_v5  ;;  %v5527_v58 = vand.u32 4294901760, %v5503_v39  ;;  %v5586_v4 = vsub.f32 %v780_v54, %v5578_v63 }
  0x7e   :  { %4153 = vmatprep.subr.mxu0 %v5202_v1  ;;  %4180 = vmatprep.subr.mxu1 %v5066_v11 }
  0x7f   :  { %4154 = vmatpush3.msra.mxu0 %v5202_v1  ;;  %4181 = vmatpush3.msra.mxu1 %v5066_v11  ;;  %v5453_v11 = vand.u32 4294901760, %v788_v9  ;;  %v5461_v15 = vand.u32 4294901760, %v5451_v10  ;;  %v5596_v20 = vand.u32 4294901760, %v5586_v4 }
  0x80   :  { %4155 = vmatprep.subr.mxu0 %v5217_v13  ;;  %4182 = vmatprep.subr.mxu1 %v5081_v16 }
  0x81   :  { %4156 = vmatpush3.msra.mxu0 %v5217_v13  ;;  %4183 = vmatpush3.msra.mxu1 %v5081_v16  ;;  %v5464_v16 = vsub.f32 %v788_v9, %v5453_v11  ;;  %v895_v28 = vsub.f32 %v5451_v10, %v5461_v15  ;;  %v909_v13 = vsub.f32 %v5497_v33, %v5520_v53  ;;  %v5588_v9 = vand.u32 4294901760, %v779_v2 }
  0x82   :  { %4157 = vmatprep.subr.mxu0 %v5238_v37  ;;  %4184 = vmatprep.subr.mxu1 %v5106_v24  ;;  %6677 = vst [vmem:[#allocation22_spill] sm:$0xff] %v5596_v20 }
  0x83   :  { %4158 = vmatpush3.msra.mxu0 %v5238_v37  ;;  %4185 = vmatpush3.msra.mxu1 %v5106_v24  ;;  %v5482_v24 = vand.u32 4294901760, %v784_v21  ;;  %v5494_v29 = vand.u32 4294901760, %v5464_v16  ;;  %v916_v37 = vsub.f32 %v5503_v39, %v5527_v58  ;;  %v910_v40 = vand.u32 4294901760, %v909_v13 }
  0x84   :  { %4159 = vmatprep.subr.mxu0 %v6675_v3  ;;  %4186 = vmatprep.subr.mxu1 %v5115_v27 }
  0x85   :  { %4160 = vmatpush3.msra.mxu0 %v6675_v3  ;;  %4187 = vmatpush3.msra.mxu1 %v5115_v27  ;;  %v782_v27 = vld [vmem:[%s6616_s3 + $0x40] sm:$0xff]  ;;  %v5509_v43 = vsub.f32 %v784_v21, %v5482_v24  ;;  %v902_v52 = vsub.f32 %v5464_v16, %v5494_v29  ;;  %v917_v7 = vand.u32 4294901760, %v916_v37  ;;  %v5599_v21 = vsub.f32 %v779_v2, %v5588_v9 }
  0x86   :  { %4161 = vmatprep.subr.mxu0 %v5267_v56  ;;  %4188 = vmatprep.subr.mxu1 %v5134_v34 }
  0x87   :  { %4162 = vmatpush3.msra.mxu0 %v5267_v56  ;;  %4189 = vmatpush3.msra.mxu1 %v5134_v34  ;;  %v5500_v34 = vand.u32 4294901760, %v783_v26  ;;  %v5533_v1 = vand.u32 4294901760, %v5509_v43 }
  0x88   :  { %4163 = vmatprep.subr.mxu0 %v5281_v12  ;;  %4190 = vmatprep.subr.mxu1 %v5158_v45 }
  0x89   :  { %4164 = vmatpush3.msra.mxu0 %v5281_v12  ;;  %4191 = vmatpush3.msra.mxu1 %v5158_v45  ;;  %v5512_v45 = vand.u32 4294901760, %v782_v27  ;;  %v930_v51 = vsub.f32 %v5509_v43, %v5533_v1 }
  0x8a   :  { %4165 = vmatprep.subr.mxu0 %v5288_v36  ;;  %4192 = vmatprep.subr.mxu1 %v5164_v47 }
  0x8b   :  { %4166 = vmatpush3.msra.mxu0 %v5288_v36  ;;  %4167 = vmatprep.mubr.f32.mxu0 %v5193_v61  ;;  %v5536_v6 = vsub.f32 %v782_v27, %v5512_v45  ;;  %v931_v36 = vand.u32 4294901760, %v930_v51  ;;  %v777_v27 = vld [vmem:[%s6616_s3 + $0x18] sm:$0xff] }
  0x8c   :  { %4193 = vmatpush3.msra.mxu1 %v5164_v47  ;;  %4168 = vmatmul.mubr.f32.vlgmr.msra.gmra.mxu0 %v5196_v62  ;;  %v896_v47 = vand.u32 4294901760, %v895_v28  ;;  %v958_v28 = vsub.f32 %v5586_v4, %v5596_v20 }
  0x8d   :  { %4194 = vmatprep.subr.mxu1 %v5182_v57  ;;  %4202 = vmatprep.mubr.f32.mxu1 %v5193_v61  ;;  %v5555_v56 = vand.u32 4294901760, %v5536_v6 }
  0x8e   :  { %4195 = vmatpush3.msra.mxu1 %v5182_v57  ;;  %4205 = vmatprep.subr.mxu0 %v5445_v5  ;;  %v5523_v57 = vsub.f32 %v783_v26, %v5500_v34  ;;  %v5601_v26 = vand.u32 4294901760, %v778_v14  ;;  %v959_v13 = vand.u32 4294901760, %v958_v28 }
  0x8f   :  { %4196 = vmatprep.subr.mxu1 %v5211_v8  ;;  %4206 = vmatpush3.msra.mxu0 %v5445_v5  ;;  %v944_v44 = vsub.f32 %v5536_v6, %v5555_v56 }
  0x90   :  { %4197 = vmatpush3.msra.mxu1 %v5211_v8  ;;  %4207 = vmatprep.subr.mxu0 %v5453_v11  ;;  %v903_v8 = vand.u32 4294901760, %v902_v52  ;;  %v5542_v30 = vand.u32 4294901760, %v5523_v57  ;;  %v5616_v52 = vand.u32 4294901760, %v777_v27 }
  0x91   :  { %4198 = vmatprep.subr.mxu1 %v5229_v31  ;;  %4208 = vmatpush3.msra.mxu0 %v5453_v11  ;;  %v945_v3 = vand.u32 4294901760, %v944_v44 }
  0x92   :  { %4199 = vmatpush3.msra.mxu1 %v5229_v31  ;;  %4209 = vmatprep.subr.mxu0 %v5466_v17  ;;  %v5545_v31 = vand.u32 4294901760, %v781_v46  ;;  %v937_v18 = vsub.f32 %v5523_v57, %v5542_v30 }
  0x93   :  { %4200 = vmatprep.subr.mxu1 %v5241_v38  ;;  %4210 = vmatpush3.msra.mxu0 %v5466_v17 }
  0x94   :  { %4201 = vmatpush3.msra.mxu1 %v5241_v38  ;;  %4211 = vmatprep.subr.mxu0 %v5478_v22  ;;  %v923_v38 = vsub.f32 %v5506_v42, %v5530_v60  ;;  %v5558_v59 = vsub.f32 %v781_v46, %v5545_v31  ;;  %v938_v55 = vand.u32 4294901760, %v937_v18  ;;  %v5611_v46 = vand.u32 4294901760, %v5599_v21 }
  0x95   :  { %4203 = vmatmul.mubr.f32.vlgmr.msra.gmra.mxu1 %v5196_v62  ;;  %4212 = vmatpush3.msra.mxu0 %v5478_v22 }
  0x96   :  { %4240 = vmatprep.subr.mxu1 %v896_v47  ;;  %4213 = vmatprep.subr.mxu0 %v5480_v23  ;;  %v924_v12 = vand.u32 4294901760, %v923_v38  ;;  %v5565_v35 = vand.u32 4294901760, %v5558_v59  ;;  %6678 = vst [vmem:[#allocation23_spill] sm:$0xff] %v5611_v46  ;;  %v965_v37 = vsub.f32 %v5599_v21, %v5611_v46 }
  0x97   :  { %4241 = vmatpush3.msra.mxu1 %v896_v47  ;;  %4214 = vmatpush3.msra.mxu0 %v5480_v23  ;;  %v5614_v47 = vsub.f32 %v778_v14, %v5601_v26 }
  0x98   :  { %4242 = vmatprep.subr.mxu1 %v903_v8  ;;  %4215 = vmatprep.subr.mxu0 %v5482_v24  ;;  %6676 = vst [vmem:[#allocation18_spill] sm:$0xff] %v5565_v35  ;;  %v951_v0 = vsub.f32 %v5558_v59, %v5565_v35 }
  0x99   :  { %4243 = vmatpush3.msra.mxu1 %v903_v8  ;;  %4216 = vmatpush3.msra.mxu0 %v5482_v24  ;;  %v776_v8 = vld [vmem:[%s6616_s3 + $0x10] sm:$0xff]  ;;  %v5626_v38 = vand.u32 4294901760, %v5614_v47 }
  0x9a   :  { %4244 = vmatprep.subr.mxu1 %v910_v40  ;;  %4217 = vmatprep.subr.mxu0 %v5500_v34  ;;  %v952_v19 = vand.u32 4294901760, %v951_v0  ;;  %v5632_v51 = vand.u32 4294901760, %v776_v8 }
  0x9b   :  { %4245 = vmatpush3.msra.mxu1 %v910_v40  ;;  %4218 = vmatpush3.msra.mxu0 %v5500_v34  ;;  %6679 = vst [vmem:[#allocation24_spill] sm:$0xff] %v5626_v38  ;;  %v5629_v40 = vsub.f32 %v777_v27, %v5616_v52  ;;  %v972_v18 = vsub.f32 %v5614_v47, %v5626_v38 }
  0x9c   :  { %4246 = vmatprep.subr.mxu1 %v917_v7  ;;  %4219 = vmatprep.subr.mxu0 %v5512_v45  ;;  %v5646_v54 = vsub.f32 %v776_v8, %v5632_v51 }
  0x9d   :  { %4247 = vmatpush3.msra.mxu1 %v917_v7  ;;  %4220 = vmatpush3.msra.mxu0 %v5512_v45  ;;  %v775_v7 = vld [vmem:[%s6616_s3 + $0x8] sm:$0xff]  ;;  %v973_v0 = vand.u32 4294901760, %v972_v18 }
  0x9e   :  { %4248 = vmatprep.subr.mxu1 %v924_v12  ;;  %4221 = vmatprep.subr.mxu0 %v5545_v31  ;;  %v5643_v44 = vand.u32 4294901760, %v775_v7 }
  0x9f   :  { %4249 = vmatpush3.msra.mxu1 %v924_v12  ;;  %4222 = vmatpush3.msra.mxu0 %v5545_v31  ;;  %v966_v12 = vand.u32 4294901760, %v965_v37 }
  0xa0   :  { %4250 = vmatprep.subr.mxu1 %v931_v36  ;;  %4223 = vmatprep.subr.mxu0 %v5578_v63 }
  0xa1   :  { %4251 = vmatpush3.msra.mxu1 %v931_v36  ;;  %4224 = vmatpush3.msra.mxu0 %v5578_v63  ;;  %v5641_v36 = vand.u32 4294901760, %v5629_v40 }
  0xa2   :  { %4252 = vmatprep.subr.mxu1 %v938_v55  ;;  %4225 = vmatprep.subr.mxu0 %v5588_v9 }
  0xa3   :  { %4253 = vmatpush3.msra.mxu1 %v938_v55  ;;  %4226 = vmatpush3.msra.mxu0 %v5588_v9  ;;  %6680 = vst [vmem:[#allocation25_spill] sm:$0xff] %v5641_v36  ;;  %v774_v55 = vld [vmem:[%s6616_s3] sm:$0xff]  ;;  %v979_v2 = vsub.f32 %v5629_v40, %v5641_v36 }
  0xa4   :  { %4254 = vmatprep.subr.mxu1 %v945_v3  ;;  %4227 = vmatprep.subr.mxu0 %v5601_v26  ;;  %v5657_v14 = vand.u32 4294901760, %v774_v55 }
  0xa5   :  { %4255 = vmatpush3.msra.mxu1 %v945_v3  ;;  %4228 = vmatpush3.msra.mxu0 %v5601_v26  ;;  %v5655_v3 = vsub.f32 %v775_v7, %v5643_v44  ;;  %v980_v27 = vand.u32 4294901760, %v979_v2 }
  0xa6   :  { %4256 = vmatprep.subr.mxu1 %v952_v19  ;;  %4229 = vmatprep.subr.mxu0 %v5616_v52  ;;  %v5668_v8 = vsub.f32 %v774_v55, %v5657_v14 }
  0xa7   :  { %4257 = vmatpush3.msra.mxu1 %v952_v19  ;;  %4230 = vmatpush3.msra.mxu0 %v5616_v52  ;;  %v5661_v19 = vand.u32 4294901760, %v5646_v54  ;;  %v5665_v28 = vand.u32 4294901760, %v5655_v3 }
  0xa8   :  { %4258 = vmatprep.subr.mxu1 %v959_v13  ;;  %4231 = vmatprep.subr.mxu0 %v5632_v51  ;;  %v5677_v7 = vand.u32 4294901760, %v5668_v8 }
  0xa9   :  { %4259 = vmatpush3.msra.mxu1 %v959_v13  ;;  %4232 = vmatpush3.msra.mxu0 %v5632_v51  ;;  %6681 = vst [vmem:[#allocation26_spill] sm:$0xff] %v5661_v19  ;;  %6682 = vst [vmem:[#allocation27_spill] sm:$0xff] %v5665_v28  ;;  %v986_v13 = vsub.f32 %v5646_v54, %v5661_v19  ;;  %v993_v37 = vsub.f32 %v5655_v3, %v5665_v28 }
  0xaa   :  { %4260 = vmatprep.subr.mxu1 %v966_v12  ;;  %4233 = vmatprep.subr.mxu0 %v5643_v44  ;;  %6683 = vst [vmem:[#allocation28_spill] sm:$0xff] %v5677_v7  ;;  %v1000_v55 = vsub.f32 %v5668_v8, %v5677_v7 }
  0xab   :  { %4261 = vmatpush3.msra.mxu1 %v966_v12  ;;  %4234 = vmatpush3.msra.mxu0 %v5643_v44  ;;  %v987_v12 = vand.u32 4294901760, %v986_v13  ;;  %v994_v18 = vand.u32 4294901760, %v993_v37 }
  0xac   :  { %4262 = vmatprep.subr.mxu1 %v973_v0  ;;  %4235 = vmatprep.subr.mxu0 %v5657_v14 }
  0xad   :  { %4263 = vmatpush3.msra.mxu1 %v973_v0  ;;  %4236 = vmatpush3.msra.mxu0 %v5657_v14  ;;  %v1001_v0 = vand.u32 4294901760, %v1000_v55 }
  0xae   :  { %4264 = vmatprep.subr.mxu1 %v980_v27  ;;  %4275 = vmatprep.subr.mxu0 %v5451_v10 }
  0xaf   :  { %4265 = vmatpush3.msra.mxu1 %v980_v27 }
  0xb0   :  { %4266 = vmatprep.subr.mxu1 %v987_v12 }
  0xb1   :  { %4267 = vmatpush3.msra.mxu1 %v987_v12 }
  0xb2   :  { %4268 = vmatprep.subr.mxu1 %v994_v18 }
  0xb3   :  { %4269 = vmatpush3.msra.mxu1 %v994_v18 }
  0xb4   :  { %4270 = vmatprep.subr.mxu1 %v1001_v0 }
  0xb5   :  { %4271 = vmatpush3.msra.mxu1 %v1001_v0 }
  0xb6   :  { %4310 = vmatprep.subr.mxu1 %v5445_v5 }
 0x109   :  { %v4029_v2 = vpop.f32.mrf.mxu0 }
 0x10b   :  { %v177_v50 = vpop.f32.mrf.mxu0 }
 0x111   :  { %v4064_v32 = vpop.f32.mrf.mxu1 }
 0x112   :  { %v345_v37 = vadd.f32 %v4064_v32, %v4029_v2 }
 0x113   :  { %v338_v13 = vpop.f32.mrf.mxu1 }
 0x114   :  { %v339_v62 = vadd.f32 %v338_v13, %v177_v50 }
 0x12a   :  { %v4099_v27 = vpop.f32.mrf.mxu0 }
 0x12b   :  { %v456_v41 = vadd.f32 %v4099_v27, %v345_v37 }
 0x12c   :  { %v448_v48 = vpop.f32.mrf.mxu0 }
 0x12d   :  { %v449_v12 = vadd.f32 %v448_v48, %v339_v62 }
 0x133   :  { %v4134_v25 = vpop.f32.mrf.mxu1 }
 0x134   :  { %v553_v55 = vadd.f32 %v4134_v25, %v456_v41 }
 0x135   :  { %v544_v61 = vpop.f32.mrf.mxu1 }
 0x136   :  { %v545_v18 = vadd.f32 %v544_v61, %v449_v12 }
 0x14c   :  { %v4169_v49 = vpop.f32.mrf.mxu0 }
 0x14d   :  { %v678_v28 = vadd.f32 %v4169_v49, %v553_v55 }
 0x14e   :  { %v671_v7 = vpop.f32.mrf.mxu0 }
 0x14f   :  { %v672_v19 = vadd.f32 %v671_v7, %v545_v18 }
 0x155   :  { %v4204_v0 = vpop.f32.mrf.mxu1 }
 0x156   :  { %v771_v36 = vadd.f32 %v4204_v0, %v678_v28 }
 0x157   :  { %v764_v38 = vpop.f32.mrf.mxu1 }
 0x158   :  { %v5684_v46 = vand.u32 4294901760, %v771_v36  ;;  %v765_v20 = vadd.f32 %v764_v38, %v672_v19  ;;  %v1475_v61 = vmul.f32 %v771_v36, %v771_v36  ;;  %v3544_v38 = vld [vmem:[%s6617_s4] ss:$0 sm:$0xff] }
 0x15a   :  { %v5687_v35 = vsub.f32 %v771_v36, %v5684_v46  ;;  %v5689_v32 = vand.u32 4294901760, %v765_v20  ;;  %v1474_v50 = vmul.f32 %v765_v20, %v765_v20 }
 0x15c   :  { %v883_v2 = vand.u32 4294901760, %v5687_v35  ;;  %v872_v62 = vsub.f32 %v765_v20, %v5689_v32  ;;  %1476 = vadd.xlane.f32.xlu0 %v1474_v50  ;;  %4272 = vmatprep.mubr.f32.mxu1 %v5689_v32 }
 0x15d   :  { %4273 = vmatmul.mubr.f32.vlgmr.msra.gmra.mxu1 %v5684_v46 }
 0x15e   :  { %4311 = vmatpush3.msra.mxu1 %v5445_v5  ;;  %v873_v25 = vand.u32 4294901760, %v872_v62  ;;  %v884_v48 = vsub.f32 %v5687_v35, %v883_v2 }
 0x15f   :  { %4312 = vmatprep.subr.mxu1 %v5453_v11 }
 0x160   :  { %4313 = vmatpush3.msra.mxu1 %v5453_v11  ;;  %1478 = vadd.xlane.f32.xlu0 %v1475_v61  ;;  %v874_v49 = vsub.f32 %v872_v62, %v873_v25  ;;  %v885_v20 = vand.u32 4294901760, %v884_v48 }
 0x161   :  { %4314 = vmatprep.subr.mxu1 %v5466_v17  ;;  %4342 = vmatprep.mubr.f32.mxu1 %v873_v25 }
 0x162   :  { %4315 = vmatpush3.msra.mxu1 %v5466_v17  ;;  %v875_v41 = vand.u32 4294901760, %v874_v49 }
 0x163   :  { %4316 = vmatprep.subr.mxu1 %v5478_v22 }
 0x164   :  { %4317 = vmatpush3.msra.mxu1 %v5478_v22  ;;  %4237 = vmatprep.mubr.f32.mxu0 %v875_v41  ;;  %v1520_v41 = vlaneseq }
 0x165   :  { %4318 = vmatprep.subr.mxu1 %v5480_v23  ;;  %4238 = vmatmul.mubr.f32.vlgmr.msra.gmra.mxu0 %v885_v20 }
 0x166   :  { %4276 = vmatpush3.msra.mxu0 %v5451_v10  ;;  %4319 = vmatpush3.msra.mxu1 %v5480_v23  ;;  %v6685_v10 = vld [vmem:[#allocation22_spill] sm:$0xff]  ;;  %v5849_v20 = vand.u32 127, %v1520_v41 }
 0x167   :  { %4277 = vmatprep.subr.mxu0 %v5464_v16  ;;  %4307 = vmatprep.mubr.f32.mxu0 %v872_v62 }
 0x168   :  { %4320 = vmatprep.subr.mxu1 %v5482_v24  ;;  %4278 = vmatpush3.msra.mxu0 %v5464_v16  ;;  %v6688_v16 = vld [vmem:[#allocation25_spill] sm:$0xff] }
 0x169   :  { %4321 = vmatpush3.msra.mxu1 %v5482_v24  ;;  %4279 = vmatprep.subr.mxu0 %v5497_v33 }
 0x16a   :  { %4322 = vmatprep.subr.mxu1 %v5500_v34  ;;  %4280 = vmatpush3.msra.mxu0 %v5497_v33 }
 0x16b   :  { %4323 = vmatpush3.msra.mxu1 %v5500_v34  ;;  %4281 = vmatprep.subr.mxu0 %v5503_v39 }
 0x16c   :  { %4324 = vmatprep.subr.mxu1 %v5512_v45  ;;  %4282 = vmatpush3.msra.mxu0 %v5503_v39 }
 0x16d   :  { %4325 = vmatpush3.msra.mxu1 %v5512_v45  ;;  %4283 = vmatprep.subr.mxu0 %v5506_v42 }
 0x16e   :  { %4326 = vmatprep.subr.mxu1 %v5545_v31  ;;  %4284 = vmatpush3.msra.mxu0 %v5506_v42 }
 0x16f   :  { %4327 = vmatpush3.msra.mxu1 %v5545_v31  ;;  %4285 = vmatprep.subr.mxu0 %v5509_v43 }
 0x170   :  { %4328 = vmatprep.subr.mxu1 %v5578_v63  ;;  %4286 = vmatpush3.msra.mxu0 %v5509_v43 }
 0x171   :  { %4329 = vmatpush3.msra.mxu1 %v5578_v63  ;;  %4287 = vmatprep.subr.mxu0 %v5523_v57 }
 0x172   :  { %4330 = vmatprep.subr.mxu1 %v5588_v9  ;;  %4288 = vmatpush3.msra.mxu0 %v5523_v57 }
 0x173   :  { %4331 = vmatpush3.msra.mxu1 %v5588_v9  ;;  %4289 = vmatprep.subr.mxu0 %v5536_v6 }
 0x174   :  { %4332 = vmatprep.subr.mxu1 %v5601_v26  ;;  %4290 = vmatpush3.msra.mxu0 %v5536_v6 }
 0x175   :  { %4333 = vmatpush3.msra.mxu1 %v5601_v26  ;;  %4291 = vmatprep.subr.mxu0 %v5558_v59 }
 0x176   :  { %4334 = vmatprep.subr.mxu1 %v5616_v52  ;;  %4292 = vmatpush3.msra.mxu0 %v5558_v59 }
 0x177   :  { %4335 = vmatpush3.msra.mxu1 %v5616_v52  ;;  %4293 = vmatprep.subr.mxu0 %v5586_v4 }
 0x178   :  { %4336 = vmatprep.subr.mxu1 %v5632_v51  ;;  %4294 = vmatpush3.msra.mxu0 %v5586_v4 }
 0x179   :  { %4337 = vmatpush3.msra.mxu1 %v5632_v51  ;;  %4295 = vmatprep.subr.mxu0 %v5599_v21 }
 0x17a   :  { %4338 = vmatprep.subr.mxu1 %v5643_v44  ;;  %4296 = vmatpush3.msra.mxu0 %v5599_v21 }
 0x17b   :  { %4339 = vmatpush3.msra.mxu1 %v5643_v44  ;;  %4297 = vmatprep.subr.mxu0 %v5614_v47 }
 0x17c   :  { %4340 = vmatprep.subr.mxu1 %v5657_v14  ;;  %4298 = vmatpush3.msra.mxu0 %v5614_v47 }
 0x17d   :  { %4341 = vmatpush3.msra.mxu1 %v5657_v14  ;;  %4299 = vmatprep.subr.mxu0 %v5629_v40 }
 0x17e   :  { %4343 = vmatmul.mubr.f32.vlgmr.msra.gmra.mxu1 %v883_v2  ;;  %4380 = vmatprep.subr.mxu1 %v5445_v5 }
 0x17f   :  { %4300 = vmatpush3.msra.mxu0 %v5629_v40  ;;  %4381 = vmatpush3.msra.mxu1 %v5445_v5  ;;  %v6684_v5 = vld [vmem:[#allocation18_spill] sm:$0xff] }
 0x180   :  { %4412 = vmatprep.mubr.f32.mxu1 %v5689_v32  ;;  %4301 = vmatprep.subr.mxu0 %v5646_v54 }
 0x181   :  { %4382 = vmatprep.subr.mxu1 %v5453_v11  ;;  %4302 = vmatpush3.msra.mxu0 %v5646_v54 }
 0x182   :  { %4383 = vmatpush3.msra.mxu1 %v5453_v11  ;;  %4303 = vmatprep.subr.mxu0 %v5655_v3  ;;  %v6686_v11 = vld [vmem:[#allocation23_spill] sm:$0xff] }
 0x183   :  { %4384 = vmatprep.subr.mxu1 %v5466_v17  ;;  %4304 = vmatpush3.msra.mxu0 %v5655_v3 }
 0x184   :  { %4385 = vmatpush3.msra.mxu1 %v5466_v17  ;;  %4305 = vmatprep.subr.mxu0 %v5668_v8  ;;  %v6689_v17 = vld [vmem:[#allocation26_spill] sm:$0xff] }
 0x185   :  { %4386 = vmatprep.subr.mxu1 %v5478_v22  ;;  %4306 = vmatpush3.msra.mxu0 %v5668_v8 }
 0x186   :  { %4387 = vmatpush3.msra.mxu1 %v5478_v22  ;;  %4308 = vmatmul.mubr.f32.vlgmr.msra.gmra.mxu0 %v5687_v35  ;;  %v6690_v22 = vld [vmem:[#allocation27_spill] sm:$0xff] }
 0x187   :  { %4345 = vmatprep.subr.mxu0 %v5461_v15  ;;  %4388 = vmatprep.subr.mxu1 %v5480_v23 }
 0x188   :  { %4346 = vmatpush3.msra.mxu0 %v5461_v15  ;;  %4377 = vmatprep.mubr.f32.mxu0 %v5689_v32  ;;  %v6687_v15 = vld [vmem:[#allocation24_spill] sm:$0xff] }
 0x189   :  { %4389 = vmatpush3.msra.mxu1 %v5480_v23  ;;  %4347 = vmatprep.subr.mxu0 %v5494_v29  ;;  %v6691_v23 = vld [vmem:[#allocation28_spill] sm:$0xff] }
 0x18a   :  { %4390 = vmatprep.subr.mxu1 %v5482_v24  ;;  %4348 = vmatpush3.msra.mxu0 %v5494_v29 }
 0x18b   :  { %4391 = vmatpush3.msra.mxu1 %v5482_v24  ;;  %4349 = vmatprep.subr.mxu0 %v5520_v53 }
 0x18c   :  { %4392 = vmatprep.subr.mxu1 %v5500_v34  ;;  %4350 = vmatpush3.msra.mxu0 %v5520_v53 }
 0x18d   :  { %4393 = vmatpush3.msra.mxu1 %v5500_v34  ;;  %4351 = vmatprep.subr.mxu0 %v5527_v58 }
 0x18e   :  { %4394 = vmatprep.subr.mxu1 %v5512_v45  ;;  %4352 = vmatpush3.msra.mxu0 %v5527_v58 }
 0x18f   :  { %4395 = vmatpush3.msra.mxu1 %v5512_v45  ;;  %4353 = vmatprep.subr.mxu0 %v5530_v60 }
 0x190   :  { %4396 = vmatprep.subr.mxu1 %v5545_v31  ;;  %4354 = vmatpush3.msra.mxu0 %v5530_v60 }
 0x191   :  { %4397 = vmatpush3.msra.mxu1 %v5545_v31  ;;  %4355 = vmatprep.subr.mxu0 %v5533_v1 }
 0x192   :  { %4398 = vmatprep.subr.mxu1 %v5578_v63  ;;  %4356 = vmatpush3.msra.mxu0 %v5533_v1 }
 0x193   :  { %4399 = vmatpush3.msra.mxu1 %v5578_v63  ;;  %4357 = vmatprep.subr.mxu0 %v5542_v30 }
 0x194   :  { %4400 = vmatprep.subr.mxu1 %v5588_v9  ;;  %4358 = vmatpush3.msra.mxu0 %v5542_v30 }
 0x195   :  { %4401 = vmatpush3.msra.mxu1 %v5588_v9  ;;  %4359 = vmatprep.subr.mxu0 %v5555_v56 }
 0x196   :  { %4402 = vmatprep.subr.mxu1 %v5601_v26  ;;  %4360 = vmatpush3.msra.mxu0 %v5555_v56 }
 0x197   :  { %4403 = vmatpush3.msra.mxu1 %v5601_v26  ;;  %4361 = vmatprep.subr.mxu0 %v6684_v5 }
 0x198   :  { %4404 = vmatprep.subr.mxu1 %v5616_v52  ;;  %4362 = vmatpush3.msra.mxu0 %v6684_v5 }
 0x199   :  { %4405 = vmatpush3.msra.mxu1 %v5616_v52  ;;  %4363 = vmatprep.subr.mxu0 %v6685_v10 }
 0x19a   :  { %4406 = vmatprep.subr.mxu1 %v5632_v51  ;;  %4364 = vmatpush3.msra.mxu0 %v6685_v10 }
 0x19b   :  { %4407 = vmatpush3.msra.mxu1 %v5632_v51  ;;  %4365 = vmatprep.subr.mxu0 %v6686_v11 }
 0x19c   :  { %4408 = vmatprep.subr.mxu1 %v5643_v44  ;;  %4366 = vmatpush3.msra.mxu0 %v6686_v11 }
 0x19d   :  { %4409 = vmatpush3.msra.mxu1 %v5643_v44  ;;  %4367 = vmatprep.subr.mxu0 %v6687_v15  ;;  %v1494_v44 = vstv %s6613_s0 }
 0x19e   :  { %4410 = vmatprep.subr.mxu1 %v5657_v14  ;;  %4368 = vmatpush3.msra.mxu0 %v6687_v15 }
 0x19f   :  { %4411 = vmatpush3.msra.mxu1 %v5657_v14  ;;  %4369 = vmatprep.subr.mxu0 %v6688_v16 }
 0x1a0   :  { %4413 = vmatmul.mubr.f32.vlgmr.msra.gmra.mxu1 %v5684_v46  ;;  %4370 = vmatpush3.msra.mxu0 %v6688_v16 }
 0x1a1   :  { %4371 = vmatprep.subr.mxu0 %v6689_v17 }
 0x1a2   :  { %4372 = vmatpush3.msra.mxu0 %v6689_v17 }
 0x1a3   :  { %4373 = vmatprep.subr.mxu0 %v6690_v22 }
 0x1a4   :  { %4374 = vmatpush3.msra.mxu0 %v6690_v22 }
 0x1a5   :  { %4375 = vmatprep.subr.mxu0 %v6691_v23 }
 0x1a6   :  { %4376 = vmatpush3.msra.mxu0 %v6691_v23 }
 0x1a7   :  { %4378 = vmatmul.mubr.f32.vlgmr.msra.gmra.mxu0 %v5684_v46 }
 0x1e5   :  { %v1477_v42 = vpop.xlane.xlu0 %1476 }
 0x1e6   :  { %v1480_v46 = vmul.f32 0.5, %v1477_v42 }
 0x1e9   :  { %v1479_v6 = vpop.xlane.xlu0 %1478 }
 0x1ea   :  { %v1481_v4 = vmul.f32 0.5, %v1479_v6 }
 0x21d   :  { %v4274_v29 = vpop.f32.mrf.mxu1 }
 0x21f   :  { %v1038_v39 = vpop.f32.mrf.mxu1 }
 0x225   :  { %v4239_v24 = vpop.f32.mrf.mxu0 }
 0x226   :  { %v1045_v43 = vadd.f32 %v4274_v29, %v4239_v24 }
 0x227   :  { %v877_v33 = vpop.f32.mrf.mxu0 }
 0x228   :  { %v1039_v57 = vadd.f32 %v1038_v39, %v877_v33 }
 0x23e   :  { %v4344_v45 = vpop.f32.mrf.mxu1 }
 0x240   :  { %v1244_v1 = vpop.f32.mrf.mxu1 }
 0x246   :  { %v4309_v34 = vpop.f32.mrf.mxu0 }
 0x247   :  { %v1156_v58 = vadd.f32 %v4309_v34, %v1045_v43 }
 0x248   :  { %v1148_v53 = vpop.f32.mrf.mxu0 }
 0x249   :  { %v1149_v60 = vadd.f32 %v1148_v53, %v1039_v57  ;;  %v1253_v30 = vadd.f32 %v4344_v45, %v1156_v58 }
 0x24b   :  { %v1245_v35 = vadd.f32 %v1244_v1, %v1149_v60 }
 0x260   :  { %v4414_v31 = vpop.f32.mrf.mxu1 }
 0x262   :  { %v1464_v26 = vpop.f32.mrf.mxu1 }
 0x267   :  { %v4379_v56 = vpop.f32.mrf.mxu0 }
 0x268   :  { %v1378_v59 = vadd.f32 %v4379_v56, %v1253_v30 }
 0x269   :  { %v1371_v63 = vpop.f32.mrf.mxu0 }
 0x26a   :  { %v1471_v9 = vadd.f32 %v4414_v31, %v1378_v59  ;;  %v1372_v21 = vadd.f32 %v1371_v63, %v1245_v35 }
 0x26c   :  { %v1483_v47 = vsub.f32 %v1471_v9, %v1481_v4  ;;  %v1465_v52 = vadd.f32 %v1464_v26, %v1372_v21 }
 0x26e   :  { %v1482_v40 = vsub.f32 %v1465_v52, %v1480_v46  ;;  %v1492_v36 = vsub.f32 %v1483_v47, %v3544_v38 }
 0x270   :  { %v1491_v51 = vsub.f32 %v1482_v40, %v3544_v38  ;;  %v1496_v14 = vmul.f32 %v1494_v44, %v1492_v36 }
 0x272   :  { %v1495_v54 = vmul.f32 %v1494_v44, %v1491_v51  ;;  %v1501_v19 = vsel %vm1497_vm0, %v1496_v14, -inf }
 0x274   :  { %v1498_v3 = vsel %vm1497_vm0, %v1495_v54, -inf }
 0x275   :  { %1499 = vmax.xlane.f32.xlu1 %v1498_v3 }
 0x279   :  { %1502 = vmax.xlane.f32.xlu1 %v1501_v19 }
 0x2fe   :  { %v1500_v28 = vpop.xlane.xlu1 %1499 }
 0x2ff   :  { %v1504_v8 = vsub.f32 %v1495_v54, %v1500_v28 }
 0x301   :  { %v1506_v7 = vmul.f32 1.442695, %v1504_v8 }
 0x302   :  { %v1503_v27 = vpop.xlane.xlu1 %1502 }
 0x303   :  { %4871 = vpow2.f32 %v1506_v7  ;;  %v1505_v13 = vsub.f32 %v1496_v14, %v1503_v27 }
 0x305   :  { %v1508_v37 = vmul.f32 1.442695, %v1505_v13 }
 0x307   :  { %4873 = vpow2.f32 %v1508_v37 }
 0x310   :  { %v4872_v12 = vpop.eup %4871 }
 0x311   :  { %v1510_v55 = vsel %vm1497_vm0, %v4872_v12, 0.0 }
 0x312   :  { %1511 = vadd.xlane.f32.xlu0 %v1510_v55 }
 0x314   :  { %v4874_v18 = vpop.eup %4873 }
 0x315   :  { %v1513_v0 = vsel %vm1497_vm0, %v4874_v18, 0.0 }
 0x316   :  { %1514 = vadd.xlane.f32.xlu1 %v1513_v0 }
 0x39b   :  { %v1512_v32 = vpop.xlane.xlu0 %1511 }
 0x39c   :  { %4875 = vrcp.f32 %v1512_v32 }
 0x39f   :  { %v1515_v50 = vpop.xlane.xlu1 %1514 }
 0x3a0   :  { %4877 = vrcp.f32 %v1515_v50 }
 0x3a9   :  { %v4876_v2 = vpop.eup %4875 }
 0x3aa   :  { %v5841_v62 = vmul.f32 %v4876_v2, %v4872_v12  ;;  %v1612_v12 = vld [vmem:[%s6620_s7] sm:$0xf]  ;;  %s4974_s7 = smov [#allocation9]  }
 0x3ab   :  { %v1621_v55 = vsel %vm1619_vm11, %v1612_v12, 0  ;;  %s3531_s18 = sshll.u32 %s4974_s7, 4  ;;  %s3532_s18 = int_to_ptr.vmem [resolvable:$true] %s3531_s18 }
 0x3ac   :  { %v1522_v61 = vsel %vm1497_vm0, %v5841_v62, -inf  ;;  %s4943_s19 = scalar_lea.vmem %s3532_s18, 256  ;;  %p4948_p2 = scmp.lt.s32.totalorder %s3532_s18, %s3532_s18 }
 0x3ad   :  { %v4878_v25 = vpop.eup %4877  ;;  %1523 = vmax.xlane.f32.xlu0 %v1522_v61  ;;  %v2127_v61 = vld [vmem:[#allocation6 + $0x78] sm:$0xff]  ;;  %p4944_p1 = scmp.ne.s32.totalorder %s3532_s18, %s4943_s19  ;;  %p4949_p3 = scmp.lt.s32.totalorder %s4943_s19, %s4943_s19 }
 0x3ae   :  { %v5845_v48 = vmul.f32 %v4878_v25, %v4874_v18  ;;  %v5882_v18 = vand.u32 4294901760, %v1621_v55 }
 0x3af   :  { %p4950_p4 = por %p4949_p3, %p4948_p2 }
 0x3b0   :  { %v1525_v49 = vsel %vm1497_vm0, %v5845_v48, -inf  ;;  %v5885_v0 = vsub.f32 %v1621_v55, %v5882_v18  ;;  %4415 = vmatprep.subr.mxu0 %v5882_v18 }
 0x3b1   :  { %1526 = vmax.xlane.f32.xlu1 %v1525_v49  ;;  %4416 = vmatpush3.msra.mxu0 %v5882_v18  ;;  %v5896_v49 = vand.u32 4294901760, %v2127_v61  ;;  %p4951_p5 = pnand %p4950_p4, %p4944_p1 }
 0x3b2   :  { %v5890_v32 = vand.u32 4294901760, %v5885_v0  ;;  %4425 = vmatprep.subr.mxu0 %v5885_v0 }
 0x3b4   :  { %v1743_v50 = vsub.f32 %v5885_v0, %v5890_v32 }
 0x3b6   :  { %v1744_v2 = vand.u32 4294901760, %v1743_v50 }
 0x3b8   :  { %4420 = vmatprep.subr.mxu1 %v1744_v2 }
 0x3b9   :  { %4421 = vmatpush3.msra.mxu1 %v1744_v2 }
 0x3ba   :  { %4430 = vmatprep.subr.mxu1 %v5882_v18 }
 0x436   :  { %v1524_v5 = vpop.xlane.xlu0 %1523 }
 0x437   :  { %vm1528_vm1 = vcmp.eq.f32.partialorder %v5841_v62, %v1524_v5 }
 0x438   :  { %v1530_v10 = vsel %vm1528_vm1, %v5849_v20, 4 }
 0x439   :  { %v1532_v11 = vsel %vm1497_vm0, %v1530_v10, 2147483647 }
 0x43a   :  { %v1527_v15 = vpop.xlane.xlu1 %1526  ;;  %v1534_v16 = vshra.s32 %v1532_v11, 16  ;;  %v1533_v33 = vand.u32 65535, %v1532_v11 }
 0x43b   :  { %vm1529_vm2 = vcmp.eq.f32.partialorder %v5845_v48, %v1527_v15  ;;  %v2126_v15 = vld [vmem:[#allocation6 + $0x70] sm:$0xff] }
 0x43c   :  { %v1531_v17 = vsel %vm1529_vm2, %v5849_v20, 4  ;;  %v1536_v22 = vcvt.s32.f32 %v1534_v16  ;;  %v1535_v39 = vcvt.s32.f32 %v1533_v33  ;;  %v5906_v33 = vand.u32 4294901760, %v2126_v15 }
 0x43d   :  { %v1547_v23 = vsel %vm1497_vm0, %v1531_v17, 2147483647  ;;  %v5899_v17 = vsub.f32 %v2127_v61, %v5896_v49 }
 0x43e   :  { %1537 = vmin.xlane.f32.xlu0 %v1536_v22  ;;  %v1549_v24 = vshra.s32 %v1547_v23, 16  ;;  %v1548_v42 = vand.u32 65535, %v1547_v23 }
 0x440   :  { %v1551_v29 = vcvt.s32.f32 %v1549_v24  ;;  %v1550_v53 = vcvt.s32.f32 %v1548_v42 }
 0x442   :  { %1552 = vmin.xlane.f32.xlu1 %v1551_v29 }
 0x4c7   :  { %v1538_v34 = vpop.xlane.xlu0 %1537 }
 0x4c8   :  { %vm1539_vm3 = vcmp.eq.f32.partialorder %v1536_v22, %v1538_v34  ;;  %v1544_v58 = vcvt.f32.s32 %v1538_v34  ;;  %v2125_v34 = vld [vmem:[#allocation6 + $0x68] sm:$0xff] }
 0x4c9   :  { %v1540_v43 = vsel %vm1539_vm3, %v1535_v39, inf }
 0x4ca   :  { %1541 = vmin.xlane.f32.xlu0 %v1540_v43  ;;  %v1545_v1 = vshll.u32 %v1544_v58, 16  ;;  %v5915_v58 = vand.u32 4294901760, %v2125_v34 }
 0x4cb   :  { %v1553_v45 = vpop.xlane.xlu1 %1552 }
 0x4cc   :  { %vm1554_vm4 = vcmp.eq.f32.partialorder %v1551_v29, %v1553_v45  ;;  %v1559_v6 = vcvt.f32.s32 %v1553_v45  ;;  %v5911_v45 = vand.u32 4294901760, %v5899_v17 }
 0x4cd   :  { %v1555_v57 = vsel %vm1554_vm4, %v1550_v53, inf  ;;  %v2124_v53 = vld [vmem:[#allocation6 + $0x60] sm:$0xff] }
 0x4ce   :  { %1556 = vmin.xlane.f32.xlu1 %v1555_v57  ;;  %v1560_v59 = vshll.u32 %v1559_v6, 16 }
 0x553   :  { %v1542_v60 = vpop.xlane.xlu0 %1541 }
 0x554   :  { %v1543_v30 = vcvt.f32.s32 %v1542_v60 }
 0x556   :  { %v5857_v31 = vadd.s32 %v1545_v1, %v1543_v30  ;;  %v2123_v1 = vld [vmem:[#allocation6 + $0x58] sm:$0xff] }
 0x557   :  { %v1557_v56 = vpop.xlane.xlu1 %1556 }
 0x558   :  { %v1558_v35 = vcvt.f32.s32 %v1557_v56  ;;  %vm1562_vm5 = vcmp.eq.s32.totalorder %v5849_v20, %v5857_v31  ;;  %v5928_v31 = vand.u32 4294901760, %v2124_v53 }
 0x559   :  { %v1566_v63 = vsel %vm1562_vm5, -inf, %v5841_v62  ;;  %v1564_v22 = vsel %vm1562_vm5, %v5841_v62, 0.0 }
 0x55a   :  { %v5865_v4 = vadd.s32 %v1560_v59, %v1558_v35  ;;  %v1568_v9 = vsel %vm1497_vm0, %v1566_v63, -inf  ;;  %v2233_v59 = vsub.f32 %v5899_v17, %v5911_v45  ;;  %v2122_v35 = vld [vmem:[#allocation6 + $0x50] sm:$0xff] }
 0x55b   :  { %1569 = vmax.xlane.f32.xlu0 %v1568_v9  ;;  %v5938_v9 = vand.u32 4294901760, %v2123_v1 }
 0x55c   :  { %vm1563_vm6 = vcmp.eq.s32.totalorder %v5849_v20, %v5865_v4  ;;  %v5936_v4 = vsub.f32 %v2125_v34, %v5915_v58  ;;  %v6692_v34 = vld [vmem:[#allocation13_spill] sm:$0xff] }
 0x55d   :  { %v1567_v21 = vsel %vm1563_vm6, -inf, %v5845_v48  ;;  %v1565_v60 = vsel %vm1563_vm6, %v5845_v48, 0.0 }
 0x55e   :  { %v1571_v26 = vsel %vm1497_vm0, %v1567_v21, -inf }
 0x55f   :  { %1572 = vmax.xlane.f32.xlu1 %v1571_v26 }
 0x5e4   :  { %v1570_v46 = vpop.xlane.xlu0 %1569 }
 0x5e5   :  { %vm1574_vm7 = vcmp.eq.f32.partialorder %v1566_v63, %v1570_v46 }
 0x5e6   :  { %v1576_v47 = vsel %vm1574_vm7, %v5849_v20, 4 }
 0x5e7   :  { %v1578_v52 = vsel %vm1497_vm0, %v1576_v47, 2147483647  ;;  %v5946_v47 = vsub.f32 %v2124_v53, %v5928_v31 }
 0x5e8   :  { %v1573_v38 = vpop.xlane.xlu1 %1572  ;;  %v1580_v40 = vshra.s32 %v1578_v52, 16  ;;  %v1579_v14 = vand.u32 65535, %v1578_v52  ;;  %v5948_v52 = vand.u32 4294901760, %v2122_v35 }
 0x5e9   :  { %vm1575_vm8 = vcmp.eq.f32.partialorder %v1567_v21, %v1573_v38  ;;  %v2120_v38 = vld [vmem:[#allocation6 + $0x40] sm:$0xff] }
 0x5ea   :  { %v1577_v51 = vsel %vm1575_vm8, %v5849_v20, 4  ;;  %v1582_v36 = vcvt.s32.f32 %v1580_v40  ;;  %v1581_v28 = vcvt.s32.f32 %v1579_v14  ;;  %v2234_v40 = vand.u32 4294901760, %v2233_v59 }
 0x5eb   :  { %v1593_v44 = vsel %vm1497_vm0, %v1577_v51, 2147483647 }
 0x5ec   :  { %1583 = vmin.xlane.f32.xlu0 %v1582_v36  ;;  %v1595_v54 = vshra.s32 %v1593_v44, 16  ;;  %v1594_v8 = vand.u32 65535, %v1593_v44 }
 0x5ee   :  { %v1597_v3 = vcvt.s32.f32 %v1595_v54  ;;  %v1596_v13 = vcvt.s32.f32 %v1594_v8  ;;  %v5955_v54 = vand.u32 4294901760, %v5936_v4 }
 0x5f0   :  { %1598 = vmin.xlane.f32.xlu1 %v1597_v3  ;;  %v2247_v55 = vsub.f32 %v5936_v4, %v5955_v54 }
 0x675   :  { %v1584_v19 = vpop.xlane.xlu0 %1583 }
 0x676   :  { %vm1585_vm9 = vcmp.eq.f32.partialorder %v1582_v36, %v1584_v19  ;;  %v1590_v25 = vcvt.f32.s32 %v1584_v19  ;;  %v5962_v19 = vand.u32 4294901760, %v2120_v38 }
 0x677   :  { %v1586_v7 = vsel %vm1585_vm9, %v1581_v28, inf  ;;  %v2119_v28 = vld [vmem:[#allocation6 + $0x38] sm:$0xff] }
 0x678   :  { %1587 = vmin.xlane.f32.xlu0 %v1586_v7  ;;  %v1591_v5 = vshll.u32 %v1590_v25, 16  ;;  %v5965_v7 = vand.u32 4294901760, %v5946_v47  ;;  %v5980_v2 = vand.u32 4294901760, %v2119_v28  ;;  %v5983_v25 = vsub.f32 %v2120_v38, %v5962_v19  ;;  %v2112_v38 = vld [vmem:[#allocation6] sm:$0xff] }
 0x679   :  { %v1599_v27 = vpop.xlane.xlu1 %1598 }
 0x67a   :  { %vm1600_vm10 = vcmp.eq.f32.partialorder %v1597_v3, %v1599_v27  ;;  %v1605_v10 = vcvt.f32.s32 %v1599_v27  ;;  %v5958_v3 = vsub.f32 %v2123_v1, %v5938_v9  ;;  %v5968_v27 = vsub.f32 %v2122_v35, %v5948_v52  ;;  %v2114_v1 = vld [vmem:[#allocation6 + $0x10] sm:$0xff] }
 0x67b   :  { %v1601_v37 = vsel %vm1600_vm10, %v1596_v13, inf }
 0x67c   :  { %1602 = vmin.xlane.f32.xlu1 %v1601_v37  ;;  %v1606_v24 = vshll.u32 %v1605_v10, 16  ;;  %v2118_v37 = vld [vmem:[#allocation6 + $0x30] sm:$0xff]  ;;  %v5978_v50 = vand.u32 4294901760, %v5958_v3 }
 0x67d   :  { %v5991_v10 = vand.u32 4294901760, %v2118_v37 }
 0x701   :  { %v1588_v41 = vpop.xlane.xlu0 %1587 }
 0x702   :  { %v1589_v11 = vcvt.f32.s32 %v1588_v41  ;;  %v2117_v41 = vld [vmem:[#allocation6 + $0x28] sm:$0xff] }
 0x704   :  { %v1592_v16 = vadd.s32 %v1591_v5, %v1589_v11  ;;  %v5989_v5 = vand.u32 4294901760, %v5968_v27 }
 0x705   :  { %v1603_v23 = vpop.xlane.xlu1 %1602 }
 0x706   :  { %vm1608_vm12 = vcmp.eq.s32.totalorder %v5849_v20, %v1592_v16  ;;  %v1604_v29 = vcvt.f32.s32 %v1603_v23  ;;  %v2248_v16 = vand.u32 4294901760, %v2247_v55  ;;  %v6001_v23 = vsub.f32 %v2119_v28, %v5980_v2 }
 0x707   :  { %v1610_v39 = vsel %vm1608_vm12, %v5841_v62, %v1564_v22  ;;  %v5923_v62 = vsub.f32 %v2126_v15, %v5906_v33  ;;  %v2116_v15 = vld [vmem:[#allocation6 + $0x20] sm:$0xff]  ;;  %v2261_v22 = vsub.f32 %v5958_v3, %v5978_v50 }
 0x708   :  { %v1614_v42 = vsel %vm1497_vm0, %v1610_v39, 0  ;;  %v1607_v43 = vadd.s32 %v1606_v24, %v1604_v29  ;;  %v6003_v24 = vand.u32 4294901760, %v2117_v41  ;;  %v2115_v29 = vld [vmem:[#allocation6 + $0x18] sm:$0xff]  ;;  %v6014_v53 = vand.u32 4294901760, %v2116_v15 }
 0x709   :  { %v5913_v57 = vand.u32 4294901760, %v1614_v42  ;;  %v5941_v21 = vand.u32 4294901760, %v5923_v62  ;;  %v6027_v59 = vand.u32 4294901760, %v2115_v29 }
 0x70a   :  { %vm1609_vm13 = vcmp.eq.s32.totalorder %v5849_v20, %v1607_v43  ;;  %v6012_v43 = vsub.f32 %v2118_v37, %v5991_v10 }
 0x70b   :  { %v1611_v6 = vsel %vm1609_vm13, %v5845_v48, %v1565_v60  ;;  %4422 = vmatprep.mubr.f32.mxu1 %v5913_v57  ;;  %v1690_v30 = vsub.f32 %v1614_v42, %v5913_v57  ;;  %v2121_v48 = vld [vmem:[#allocation6 + $0x48] sm:$0xff]  ;;  %v2240_v14 = vsub.f32 %v5923_v62, %v5941_v21  ;;  %v2268_v42 = vsub.f32 %v5968_v27, %v5989_v5 }
 0x70c   :  { %v1617_v56 = vsel %vm1497_vm0, %v1611_v6, 0  ;;  %v5951_v51 = vand.u32 4294901760, %v2121_v48  ;;  %v2262_v6 = vand.u32 4294901760, %v2261_v22 }
 0x70d   :  { %v5933_v63 = vand.u32 4294901760, %v1617_v56  ;;  %v1691_v20 = vand.u32 4294901760, %v1690_v30  ;;  %v2241_v61 = vand.u32 4294901760, %v2240_v14  ;;  %v2269_v35 = vand.u32 4294901760, %v2268_v42 }
 0x70e   :  { %v5973_v13 = vsub.f32 %v2121_v48, %v5951_v51  ;;  %v6036_v48 = vsub.f32 %v2116_v15, %v6014_v53 }
 0x70f   :  { %4423 = vmatmul.mubr.f32.vlgmr.msra.gmra.mxu1 %v5933_v63  ;;  %v1692_v26 = vsub.f32 %v1690_v30, %v1691_v20  ;;  %v1700_v46 = vsub.f32 %v1617_v56, %v5933_v63  ;;  %v6025_v56 = vsub.f32 %v2117_v41, %v6003_v24 }
 0x710   :  { %4432 = vmatprep.mubr.f32.mxu1 %v1691_v20  ;;  %4431 = vmatpush3.msra.mxu1 %v5882_v18  ;;  %v5995_v11 = vand.u32 4294901760, %v5973_v13  ;;  %v6033_v20 = vand.u32 4294901760, %v6012_v43 }
 0x711   :  { %v1693_v36 = vand.u32 4294901760, %v1692_v26  ;;  %v1701_v44 = vand.u32 4294901760, %v1700_v46  ;;  %4440 = vmatprep.subr.mxu1 %v5882_v18  ;;  %v6038_v26 = vand.u32 4294901760, %v2114_v1 }
 0x712   :  { %v2275_v60 = vsub.f32 %v5973_v13, %v5995_v11  ;;  %v2296_v28 = vsub.f32 %v6012_v43, %v6033_v20 }
 0x713   :  { %4417 = vmatprep.mubr.f32.mxu0 %v1693_v36  ;;  %4433 = vmatmul.mubr.f32.vlgmr.msra.gmra.mxu1 %v1701_v44  ;;  %v1702_v8 = vsub.f32 %v1700_v46, %v1701_v44  ;;  %v6048_v36 = vsub.f32 %v2115_v29, %v6027_v59  ;;  %v6060_v37 = vsub.f32 %v2114_v1, %v6038_v26 }
 0x714   :  { %4442 = vmatprep.mubr.f32.mxu1 %v5913_v57  ;;  %4441 = vmatpush3.msra.mxu1 %v5882_v18  ;;  %v2254_v18 = vsub.f32 %v5946_v47, %v5965_v7  ;;  %v2297_v15 = vand.u32 4294901760, %v2296_v28  ;;  %v6693_v28 = vld [vmem:[#allocation20_spill] sm:$0xff] }
 0x715   :  { %v1703_v12 = vand.u32 4294901760, %v1702_v8  ;;  %4480 = vmatprep.subr.mxu1 %v2234_v40  ;;  %v6057_v8 = vand.u32 4294901760, %v6036_v48  ;;  %v6069_v41 = vand.u32 4294901760, %v6048_v36  ;;  %v6079_v22 = vand.u32 4294901760, %v6060_v37 }
 0x716   :  { %v2255_v39 = vand.u32 4294901760, %v2254_v18 }
 0x717   :  { %4418 = vmatmul.mubr.f32.vlgmr.msra.gmra.mxu0 %v1703_v12  ;;  %4443 = vmatmul.mubr.f32.vlgmr.msra.gmra.mxu1 %v5933_v63  ;;  %v6062_v12 = vand.u32 4294901760, %v2112_v38  ;;  %v2317_v42 = vsub.f32 %v6048_v36, %v6069_v41 }
 0x718   :  { %4426 = vmatpush3.msra.mxu0 %v5885_v0  ;;  %4427 = vmatprep.mubr.f32.mxu0 %v1690_v30  ;;  %v6006_v0 = vand.u32 4294901760, %v5983_v25  ;;  %v6022_v30 = vand.u32 4294901760, %v6001_v23 }
 0x719   :  { %4435 = vmatprep.subr.mxu0 %v5890_v32  ;;  %4481 = vmatpush3.msra.mxu1 %v2234_v40  ;;  %v6045_v40 = vand.u32 4294901760, %v6025_v56  ;;  %v6082_v29 = vsub.f32 %v2112_v38, %v6062_v12 }
 0x71a   :  { %4482 = vmatprep.subr.mxu1 %v2241_v61  ;;  %4512 = vmatprep.mubr.f32.mxu1 %v6692_v34 }
 0x71b   :  { %4428 = vmatmul.mubr.f32.vlgmr.msra.gmra.mxu0 %v1700_v46  ;;  %4483 = vmatpush3.msra.mxu1 %v2241_v61  ;;  %v2276_v46 = vand.u32 4294901760, %v2275_v60  ;;  %v2303_v61 = vsub.f32 %v6025_v56, %v6045_v40 }
 0x71c   :  { %4436 = vmatpush3.msra.mxu0 %v5890_v32  ;;  %4437 = vmatprep.mubr.f32.mxu0 %v5913_v57  ;;  %v2282_v32 = vsub.f32 %v5983_v25, %v6006_v0  ;;  %v2113_v57 = vld [vmem:[#allocation6 + $0x8] sm:$0xff] }
 0x71d   :  { %4445 = vmatprep.subr.mxu0 %v5896_v49  ;;  %4484 = vmatprep.subr.mxu1 %v2248_v16  ;;  %v6050_v44 = vand.u32 4294901760, %v2113_v57 }
 0x71e   :  { %4485 = vmatpush3.msra.mxu1 %v2248_v16  ;;  %v2283_v14 = vand.u32 4294901760, %v2282_v32  ;;  %v2310_v16 = vsub.f32 %v6036_v48, %v6057_v8  ;;  %v6096_v32 = vand.u32 4294901760, %v6082_v29 }
 0x71f   :  { %4438 = vmatmul.mubr.f32.vlgmr.msra.gmra.mxu0 %v5933_v63  ;;  %4486 = vmatprep.subr.mxu1 %v2255_v39  ;;  %v2289_v63 = vsub.f32 %v6001_v23, %v6022_v30  ;;  %v6072_v18 = vsub.f32 %v2113_v57, %v6050_v44  ;;  %v2318_v57 = vand.u32 4294901760, %v2317_v42 }
 0x720   :  { %4446 = vmatpush3.msra.mxu0 %v5896_v49  ;;  %4487 = vmatpush3.msra.mxu1 %v2255_v39  ;;  %v2304_v39 = vand.u32 4294901760, %v2303_v61  ;;  %v2311_v1 = vand.u32 4294901760, %v2310_v16  ;;  %v2338_v38 = vsub.f32 %v6082_v29, %v6096_v32  ;;  %v6695_v61 = vld [vmem:[#allocation21_spill] sm:$0xff] }
 0x721   :  { %4447 = vmatprep.subr.mxu0 %v5906_v33  ;;  %4488 = vmatprep.subr.mxu1 %v2262_v6  ;;  %v2290_v55 = vand.u32 4294901760, %v2289_v63  ;;  %v6089_v60 = vand.u32 4294901760, %v6072_v18 }
 0x722   :  { %4448 = vmatpush3.msra.mxu0 %v5906_v33  ;;  %4489 = vmatpush3.msra.mxu1 %v2262_v6  ;;  %v2324_v6 = vsub.f32 %v6060_v37, %v6079_v22 }
 0x723   :  { %4449 = vmatprep.subr.mxu0 %v5915_v58  ;;  %4490 = vmatprep.subr.mxu1 %v2269_v35 }
 0x724   :  { %4450 = vmatpush3.msra.mxu0 %v5915_v58  ;;  %4491 = vmatpush3.msra.mxu1 %v2269_v35  ;;  %v2331_v35 = vsub.f32 %v6072_v18, %v6089_v60 }
 0x725   :  { %4451 = vmatprep.subr.mxu0 %v5928_v31  ;;  %4492 = vmatprep.subr.mxu1 %v2276_v46 }
 0x726   :  { %4452 = vmatpush3.msra.mxu0 %v5928_v31  ;;  %4493 = vmatpush3.msra.mxu1 %v2276_v46  ;;  %v2325_v46 = vand.u32 4294901760, %v2324_v6  ;;  %v2332_v63 = vand.u32 4294901760, %v2331_v35 }
 0x727   :  { %4453 = vmatprep.subr.mxu0 %v5938_v9  ;;  %4494 = vmatprep.subr.mxu1 %v2283_v14 }
 0x728   :  { %4454 = vmatpush3.msra.mxu0 %v5938_v9  ;;  %4495 = vmatpush3.msra.mxu1 %v2283_v14  ;;  %v2339_v14 = vand.u32 4294901760, %v2338_v38 }
 0x729   :  { %4455 = vmatprep.subr.mxu0 %v5948_v52  ;;  %4496 = vmatprep.subr.mxu1 %v2290_v55 }
 0x72a   :  { %4456 = vmatpush3.msra.mxu0 %v5948_v52  ;;  %4497 = vmatpush3.msra.mxu1 %v2290_v55  ;;  %v6694_v55 = vld [vmem:[#allocation14_spill] sm:$0xff] }
 0x72b   :  { %4457 = vmatprep.subr.mxu0 %v5951_v51  ;;  %4498 = vmatprep.subr.mxu1 %v2297_v15 }
 0x72c   :  { %4458 = vmatpush3.msra.mxu0 %v5951_v51  ;;  %4499 = vmatpush3.msra.mxu1 %v2297_v15 }
 0x72d   :  { %4459 = vmatprep.subr.mxu0 %v5962_v19  ;;  %4500 = vmatprep.subr.mxu1 %v2304_v39 }
 0x72e   :  { %4460 = vmatpush3.msra.mxu0 %v5962_v19  ;;  %4501 = vmatpush3.msra.mxu1 %v2304_v39 }
 0x72f   :  { %4461 = vmatprep.subr.mxu0 %v5980_v2  ;;  %4502 = vmatprep.subr.mxu1 %v2311_v1 }
 0x730   :  { %4462 = vmatpush3.msra.mxu0 %v5980_v2  ;;  %4503 = vmatpush3.msra.mxu1 %v2311_v1 }
 0x731   :  { %4463 = vmatprep.subr.mxu0 %v5991_v10  ;;  %4504 = vmatprep.subr.mxu1 %v2318_v57 }
 0x732   :  { %4464 = vmatpush3.msra.mxu0 %v5991_v10  ;;  %4505 = vmatpush3.msra.mxu1 %v2318_v57 }
 0x733   :  { %4465 = vmatprep.subr.mxu0 %v6003_v24  ;;  %4506 = vmatprep.subr.mxu1 %v2325_v46 }
 0x734   :  { %4466 = vmatpush3.msra.mxu0 %v6003_v24  ;;  %4507 = vmatpush3.msra.mxu1 %v2325_v46 }
 0x735   :  { %4467 = vmatprep.subr.mxu0 %v6014_v53  ;;  %4508 = vmatprep.subr.mxu1 %v2332_v63 }
 0x736   :  { %4468 = vmatpush3.msra.mxu0 %v6014_v53  ;;  %4509 = vmatpush3.msra.mxu1 %v2332_v63 }
 0x737   :  { %4469 = vmatprep.subr.mxu0 %v6027_v59  ;;  %4510 = vmatprep.subr.mxu1 %v2339_v14 }
 0x738   :  { %4470 = vmatpush3.msra.mxu0 %v6027_v59  ;;  %4477 = vmatprep.mubr.f32.mxu0 %v6693_v28 }
 0x739   :  { %4471 = vmatprep.subr.mxu0 %v6038_v26  ;;  %4511 = vmatpush3.msra.mxu1 %v2339_v14  ;;  %v2826_v14 = vld [vmem:[#allocation8 + $0x20] sm:$0xff] }
 0x73a   :  { %4472 = vmatpush3.msra.mxu0 %v6038_v26  ;;  %4513 = vmatmul.mubr.f32.vlgmr.msra.gmra.mxu1 %v6694_v55 }
 0x73b   :  { %4473 = vmatprep.subr.mxu0 %v6050_v44  ;;  %4550 = vmatprep.subr.mxu1 %v5896_v49 }
 0x73c   :  { %4474 = vmatpush3.msra.mxu0 %v6050_v44  ;;  %4551 = vmatpush3.msra.mxu1 %v5896_v49 }
 0x73d   :  { %4475 = vmatprep.subr.mxu0 %v6062_v12  ;;  %4552 = vmatprep.subr.mxu1 %v5906_v33 }
 0x73e   :  { %4476 = vmatpush3.msra.mxu0 %v6062_v12  ;;  %4553 = vmatpush3.msra.mxu1 %v5906_v33 }
 0x73f   :  { %4478 = vmatmul.mubr.f32.vlgmr.msra.gmra.mxu0 %v6695_v61  ;;  %4515 = vmatprep.subr.mxu0 %v5899_v17 }
 0x740   :  { %4516 = vmatpush3.msra.mxu0 %v5899_v17  ;;  %4554 = vmatprep.subr.mxu1 %v5915_v58  ;;  %v6696_v17 = vld [vmem:[#allocation15_spill] sm:$0xff] }
 0x741   :  { %4517 = vmatprep.subr.mxu0 %v5923_v62  ;;  %4555 = vmatpush3.msra.mxu1 %v5915_v58 }
 0x742   :  { %4518 = vmatpush3.msra.mxu0 %v5923_v62  ;;  %4556 = vmatprep.subr.mxu1 %v5928_v31  ;;  %v6697_v62 = vld [vmem:[#allocation17_spill] sm:$0xff] }
 0x743   :  { %4519 = vmatprep.subr.mxu0 %v5936_v4  ;;  %4557 = vmatpush3.msra.mxu1 %v5928_v31 }
 0x744   :  { %4520 = vmatpush3.msra.mxu0 %v5936_v4  ;;  %4558 = vmatprep.subr.mxu1 %v5938_v9  ;;  %v6698_v4 = vld [vmem:[#allocation16_spill] sm:$0xff] }
 0x745   :  { %4521 = vmatprep.subr.mxu0 %v5946_v47  ;;  %4559 = vmatpush3.msra.mxu1 %v5938_v9 }
 0x746   :  { %4522 = vmatpush3.msra.mxu0 %v5946_v47  ;;  %4560 = vmatprep.subr.mxu1 %v5948_v52  ;;  %v6699_v47 = vld [vmem:[#allocation19_spill] sm:$0xff] }
 0x747   :  { %4523 = vmatprep.subr.mxu0 %v5958_v3  ;;  %4561 = vmatpush3.msra.mxu1 %v5948_v52 }
 0x748   :  { %4524 = vmatpush3.msra.mxu0 %v5958_v3  ;;  %4562 = vmatprep.subr.mxu1 %v5951_v51 }
 0x749   :  { %4525 = vmatprep.subr.mxu0 %v5968_v27  ;;  %4563 = vmatpush3.msra.mxu1 %v5951_v51 }
 0x74a   :  { %4526 = vmatpush3.msra.mxu0 %v5968_v27  ;;  %4564 = vmatprep.subr.mxu1 %v5962_v19 }
 0x74b   :  { %4527 = vmatprep.subr.mxu0 %v5973_v13  ;;  %4565 = vmatpush3.msra.mxu1 %v5962_v19 }
 0x74c   :  { %4528 = vmatpush3.msra.mxu0 %v5973_v13  ;;  %4566 = vmatprep.subr.mxu1 %v5980_v2  ;;  %v2834_v13 = vld [vmem:[#allocation8 + $0x60] sm:$0xff] }
 0x74d   :  { %4529 = vmatprep.subr.mxu0 %v5983_v25  ;;  %4567 = vmatpush3.msra.mxu1 %v5980_v2 }
 0x74e   :  { %4530 = vmatpush3.msra.mxu0 %v5983_v25  ;;  %4568 = vmatprep.subr.mxu1 %v5991_v10  ;;  %v2833_v25 = vld [vmem:[#allocation8 + $0x58] sm:$0xff] }
 0x74f   :  { %4531 = vmatprep.subr.mxu0 %v6001_v23  ;;  %4569 = vmatpush3.msra.mxu1 %v5991_v10 }
 0x750   :  { %4532 = vmatpush3.msra.mxu0 %v6001_v23  ;;  %4570 = vmatprep.subr.mxu1 %v6003_v24  ;;  %v2832_v23 = vld [vmem:[#allocation8 + $0x50] sm:$0xff] }
 0x751   :  { %4533 = vmatprep.subr.mxu0 %v6012_v43  ;;  %4571 = vmatpush3.msra.mxu1 %v6003_v24 }
 0x752   :  { %4534 = vmatpush3.msra.mxu0 %v6012_v43  ;;  %4572 = vmatprep.subr.mxu1 %v6014_v53  ;;  %v6311_v43 = vand.u32 4294901760, %v2832_v23 }
 0x753   :  { %4535 = vmatprep.subr.mxu0 %v6025_v56  ;;  %4573 = vmatpush3.msra.mxu1 %v6014_v53 }
 0x754   :  { %4536 = vmatpush3.msra.mxu0 %v6025_v56  ;;  %4574 = vmatprep.subr.mxu1 %v6027_v59 }
 0x755   :  { %4537 = vmatprep.subr.mxu0 %v6036_v48  ;;  %4575 = vmatpush3.msra.mxu1 %v6027_v59 }
 0x756   :  { %4538 = vmatpush3.msra.mxu0 %v6036_v48  ;;  %4576 = vmatprep.subr.mxu1 %v6038_v26 }
 0x757   :  { %4539 = vmatprep.subr.mxu0 %v6048_v36  ;;  %4577 = vmatpush3.msra.mxu1 %v6038_v26 }
 0x758   :  { %4540 = vmatpush3.msra.mxu0 %v6048_v36  ;;  %4578 = vmatprep.subr.mxu1 %v6050_v44 }
 0x759   :  { %4541 = vmatprep.subr.mxu0 %v6060_v37  ;;  %4579 = vmatpush3.msra.mxu1 %v6050_v44 }
 0x75a   :  { %4542 = vmatpush3.msra.mxu0 %v6060_v37  ;;  %4580 = vmatprep.subr.mxu1 %v6062_v12 }
 0x75b   :  { %4543 = vmatprep.subr.mxu0 %v6072_v18  ;;  %4547 = vmatprep.mubr.f32.mxu0 %v6696_v17 }
 0x75c   :  { %4544 = vmatpush3.msra.mxu0 %v6072_v18  ;;  %4581 = vmatpush3.msra.mxu1 %v6062_v12 }
 0x75d   :  { %4545 = vmatprep.subr.mxu0 %v6082_v29  ;;  %4582 = vmatprep.mubr.f32.mxu1 %v6697_v62  ;;  %v6383_v62 = vand.u32 4294901760, %v2826_v14 }
 0x75e   :  { %4546 = vmatpush3.msra.mxu0 %v6082_v29  ;;  %4620 = vmatprep.subr.mxu1 %v5896_v49  ;;  %v2828_v29 = vld [vmem:[#allocation8 + $0x30] sm:$0xff] }
 0x75f   :  { %4548 = vmatmul.mubr.f32.vlgmr.msra.gmra.mxu0 %v6698_v4  ;;  %4585 = vmatprep.subr.mxu0 %v5911_v45  ;;  %v6356_v1 = vand.u32 4294901760, %v2828_v29  ;;  %v2825_v4 = vld [vmem:[#allocation8 + $0x18] sm:$0xff] }
 0x760   :  { %4583 = vmatmul.mubr.f32.vlgmr.msra.gmra.mxu1 %v6699_v47  ;;  %4586 = vmatpush3.msra.mxu0 %v5911_v45 }
 0x761   :  { %4621 = vmatpush3.msra.mxu1 %v5896_v49  ;;  %4587 = vmatprep.subr.mxu0 %v5941_v21  ;;  %v2837_v49 = vld [vmem:[#allocation8 + $0x78] sm:$0xff]  ;;  %v6368_v46 = vsub.f32 %v2828_v29, %v6356_v1 }
 0x762   :  { %4622 = vmatprep.subr.mxu1 %v5906_v33  ;;  %4588 = vmatpush3.msra.mxu0 %v5941_v21  ;;  %v6260_v45 = vand.u32 4294901760, %v2837_v49 }
 0x763   :  { %4623 = vmatpush3.msra.mxu1 %v5906_v33  ;;  %4589 = vmatprep.subr.mxu0 %v5955_v54  ;;  %v2836_v33 = vld [vmem:[#allocation8 + $0x70] sm:$0xff]  ;;  %v6377_v61 = vand.u32 4294901760, %v6368_v46 }
 0x764   :  { %4624 = vmatprep.subr.mxu1 %v5915_v58  ;;  %4590 = vmatpush3.msra.mxu0 %v5955_v54 }
 0x765   :  { %4625 = vmatpush3.msra.mxu1 %v5915_v58  ;;  %4591 = vmatprep.subr.mxu0 %v5965_v7  ;;  %v6262_v58 = vand.u32 4294901760, %v2836_v33  ;;  %6701 = vst [vmem:[#allocation22_spill] sm:$0xff] %v6377_v61 }
 0x766   :  { %4626 = vmatprep.subr.mxu1 %v5928_v31  ;;  %4592 = vmatpush3.msra.mxu0 %v5965_v7  ;;  %v2835_v7 = vld [vmem:[#allocation8 + $0x68] sm:$0xff] }
 0x767   :  { %4627 = vmatpush3.msra.mxu1 %v5928_v31  ;;  %4593 = vmatprep.subr.mxu0 %v5978_v50  ;;  %v6265_v31 = vsub.f32 %v2837_v49, %v6260_v45  ;;  %v6284_v27 = vand.u32 4294901760, %v2835_v7  ;;  %v3006_v49 = vsub.f32 %v6368_v46, %v6377_v61 }
 0x768   :  { %4628 = vmatprep.subr.mxu1 %v5938_v9  ;;  %4594 = vmatpush3.msra.mxu0 %v5978_v50 }
 0x769   :  { %4629 = vmatpush3.msra.mxu1 %v5938_v9  ;;  %4595 = vmatprep.subr.mxu0 %v5989_v5  ;;  %v6268_v9 = vsub.f32 %v2836_v33, %v6262_v58  ;;  %v6273_v21 = vand.u32 4294901760, %v6265_v31  ;;  %v6287_v50 = vsub.f32 %v2835_v7, %v6284_v27 }
 0x76a   :  { %4630 = vmatprep.subr.mxu1 %v5948_v52  ;;  %4596 = vmatpush3.msra.mxu0 %v5989_v5 }
 0x76b   :  { %4631 = vmatpush3.msra.mxu1 %v5948_v52  ;;  %4597 = vmatprep.subr.mxu0 %v5995_v11  ;;  %v6276_v52 = vand.u32 4294901760, %v6268_v9  ;;  %v6294_v5 = vand.u32 4294901760, %v6287_v50 }
 0x76c   :  { %4632 = vmatprep.subr.mxu1 %v5951_v51  ;;  %4598 = vmatpush3.msra.mxu0 %v5995_v11  ;;  %v6299_v11 = vand.u32 4294901760, %v2833_v25 }
 0x76d   :  { %4633 = vmatpush3.msra.mxu1 %v5951_v51  ;;  %4599 = vmatprep.subr.mxu0 %v6006_v0  ;;  %v2943_v51 = vsub.f32 %v6265_v31, %v6273_v21  ;;  %v2950_v54 = vsub.f32 %v6268_v9, %v6276_v52 }
 0x76e   :  { %4634 = vmatprep.subr.mxu1 %v5962_v19  ;;  %4600 = vmatpush3.msra.mxu0 %v6006_v0 }
 0x76f   :  { %4635 = vmatpush3.msra.mxu1 %v5962_v19  ;;  %4601 = vmatprep.subr.mxu0 %v6022_v30  ;;  %v2944_v3 = vand.u32 4294901760, %v2943_v51  ;;  %v2951_v19 = vand.u32 4294901760, %v2950_v54  ;;  %v6391_v51 = vand.u32 4294901760, %v2825_v4  ;;  %v6395_v54 = vsub.f32 %v2826_v14, %v6383_v62 }
 0x770   :  { %4636 = vmatprep.subr.mxu1 %v5980_v2  ;;  %4602 = vmatpush3.msra.mxu0 %v6022_v30 }
 0x771   :  { %4637 = vmatpush3.msra.mxu1 %v5980_v2  ;;  %4603 = vmatprep.subr.mxu0 %v6033_v20  ;;  %v6289_v2 = vand.u32 4294901760, %v2834_v13 }
 0x772   :  { %4638 = vmatprep.subr.mxu1 %v5991_v10  ;;  %4604 = vmatpush3.msra.mxu0 %v6033_v20  ;;  %v6321_v20 = vsub.f32 %v2832_v23, %v6311_v43 }
 0x773   :  { %4639 = vmatpush3.msra.mxu1 %v5991_v10  ;;  %4605 = vmatprep.subr.mxu0 %v6045_v40  ;;  %v6297_v10 = vsub.f32 %v2834_v13, %v6289_v2  ;;  %v6401_v13 = vsub.f32 %v2825_v4, %v6391_v51 }
 0x774   :  { %4640 = vmatprep.subr.mxu1 %v6003_v24  ;;  %4606 = vmatpush3.msra.mxu0 %v6045_v40 }
 0x775   :  { %4641 = vmatpush3.msra.mxu1 %v6003_v24  ;;  %4607 = vmatprep.subr.mxu0 %v6057_v8  ;;  %v2957_v24 = vsub.f32 %v6287_v50, %v6294_v5  ;;  %v6306_v0 = vand.u32 4294901760, %v6297_v10 }
 0x776   :  { %4642 = vmatprep.subr.mxu1 %v6014_v53  ;;  %4608 = vmatpush3.msra.mxu0 %v6057_v8 }
 0x777   :  { %4643 = vmatpush3.msra.mxu1 %v6014_v53  ;;  %4609 = vmatprep.subr.mxu0 %v6069_v41  ;;  %v2831_v53 = vld [vmem:[#allocation8 + $0x48] sm:$0xff]  ;;  %v2958_v30 = vand.u32 4294901760, %v2957_v24  ;;  %v2964_v56 = vsub.f32 %v6297_v10, %v6306_v0  ;;  %v6407_v24 = vand.u32 4294901760, %v6395_v54 }
 0x778   :  { %4644 = vmatprep.subr.mxu1 %v6027_v59  ;;  %4610 = vmatpush3.msra.mxu0 %v6069_v41  ;;  %v6324_v48 = vand.u32 4294901760, %v2831_v53 }
 0x779   :  { %4645 = vmatpush3.msra.mxu1 %v6027_v59  ;;  %4611 = vmatprep.subr.mxu0 %v6079_v22  ;;  %v2965_v40 = vand.u32 4294901760, %v2964_v56  ;;  %6703 = vst [vmem:[#allocation24_spill] sm:$0xff] %v6407_v24  ;;  %v6411_v56 = vand.u32 4294901760, %v6401_v13 }
 0x77a   :  { %4646 = vmatprep.subr.mxu1 %v6038_v26  ;;  %4612 = vmatpush3.msra.mxu0 %v6079_v22  ;;  %v6335_v37 = vsub.f32 %v2831_v53, %v6324_v48  ;;  %v2823_v53 = vld [vmem:[#allocation8 + $0x8] sm:$0xff] }
 0x77b   :  { %4647 = vmatpush3.msra.mxu1 %v6038_v26  ;;  %4613 = vmatprep.subr.mxu0 %v6089_v60  ;;  %v2830_v26 = vld [vmem:[#allocation8 + $0x40] sm:$0xff]  ;;  %6704 = vst [vmem:[#allocation25_spill] sm:$0xff] %v6411_v56 }
 0x77c   :  { %4648 = vmatprep.subr.mxu1 %v6050_v44  ;;  %4614 = vmatpush3.msra.mxu0 %v6089_v60  ;;  %v6332_v8 = vand.u32 4294901760, %v2830_v26  ;;  %v6347_v22 = vand.u32 4294901760, %v6335_v37 }
 0x77d   :  { %4649 = vmatpush3.msra.mxu1 %v6050_v44  ;;  %4615 = vmatprep.subr.mxu0 %v6096_v32  ;;  %v6330_v44 = vand.u32 4294901760, %v6321_v20 }
 0x77e   :  { %4650 = vmatprep.subr.mxu1 %v6062_v12  ;;  %4616 = vmatpush3.msra.mxu0 %v6096_v32  ;;  %v6341_v15 = vsub.f32 %v2830_v26, %v6332_v8  ;;  %v2985_v6 = vsub.f32 %v6335_v37, %v6347_v22  ;;  %v2827_v32 = vld [vmem:[#allocation8 + $0x28] sm:$0xff] }
 0x77f   :  { %4617 = vmatprep.mubr.f32.mxu0 %v6692_v34  ;;  %4651 = vmatpush3.msra.mxu1 %v6062_v12  ;;  %v2829_v12 = vld [vmem:[#allocation8 + $0x38] sm:$0xff]  ;;  %v2978_v18 = vsub.f32 %v6321_v20, %v6330_v44  ;;  %v6370_v38 = vand.u32 4294901760, %v2827_v32 }
 0x780   :  { %4652 = vmatprep.mubr.f32.mxu1 %v6692_v34  ;;  %4618 = vmatmul.mubr.f32.vlgmr.msra.gmra.mxu0 %v6694_v55  ;;  %v6309_v34 = vsub.f32 %v2833_v25, %v6299_v11  ;;  %v6343_v16 = vand.u32 4294901760, %v2829_v12  ;;  %v6351_v42 = vand.u32 4294901760, %v6341_v15  ;;  %v2986_v63 = vand.u32 4294901760, %v2985_v6 }
 0x781   :  { %4653 = vmatmul.mubr.f32.vlgmr.msra.gmra.mxu1 %v6694_v55  ;;  %4655 = vmatprep.subr.mxu0 %v6260_v45  ;;  %v2979_v39 = vand.u32 4294901760, %v2978_v18  ;;  %v6380_v17 = vsub.f32 %v2827_v32, %v6370_v38 }
 0x782   :  { %4656 = vmatpush3.msra.mxu0 %v6260_v45  ;;  %4690 = vmatprep.subr.mxu1 %v2944_v3  ;;  %v6318_v59 = vand.u32 4294901760, %v6309_v34  ;;  %v6354_v60 = vsub.f32 %v2829_v12, %v6343_v16  ;;  %v2992_v57 = vsub.f32 %v6341_v15, %v6351_v42  ;;  %v2822_v12 = vld [vmem:[#allocation8] sm:$0xff] }
 0x783   :  { %4657 = vmatprep.subr.mxu0 %v6262_v58  ;;  %4691 = vmatpush3.msra.mxu1 %v2944_v3  ;;  %v6389_v33 = vand.u32 4294901760, %v6380_v17  ;;  %v2824_v3 = vld [vmem:[#allocation8 + $0x10] sm:$0xff] }
 0x784   :  { %4658 = vmatpush3.msra.mxu0 %v6262_v58  ;;  %4692 = vmatprep.subr.mxu1 %v2951_v19  ;;  %v2971_v36 = vsub.f32 %v6309_v34, %v6318_v59  ;;  %v6365_v35 = vand.u32 4294901760, %v6354_v60  ;;  %v2993_v28 = vand.u32 4294901760, %v2992_v57  ;;  %v6403_v25 = vand.u32 4294901760, %v2824_v3 }
 0x785   :  { %4693 = vmatpush3.msra.mxu1 %v2951_v19  ;;  %4659 = vmatprep.subr.mxu0 %v6284_v27  ;;  %6702 = vst [vmem:[#allocation23_spill] sm:$0xff] %v6389_v33  ;;  %v3007_v19 = vand.u32 4294901760, %v3006_v49  ;;  %v3013_v7 = vsub.f32 %v6380_v17, %v6389_v33 }
 0x786   :  { %4660 = vmatpush3.msra.mxu0 %v6284_v27  ;;  %4694 = vmatprep.subr.mxu1 %v2958_v30  ;;  %v2972_v41 = vand.u32 4294901760, %v2971_v36  ;;  %6700 = vst [vmem:[#allocation18_spill] sm:$0xff] %v6365_v35  ;;  %v2999_v55 = vsub.f32 %v6354_v60, %v6365_v35  ;;  %v6414_v26 = vsub.f32 %v2824_v3, %v6403_v25 }
 0x787   :  { %4661 = vmatprep.subr.mxu0 %v6289_v2  ;;  %4695 = vmatpush3.msra.mxu1 %v2958_v30  ;;  %v3014_v30 = vand.u32 4294901760, %v3013_v7  ;;  %v3020_v36 = vsub.f32 %v6395_v54, %v6407_v24 }
 0x788   :  { %4662 = vmatpush3.msra.mxu0 %v6289_v2  ;;  %4696 = vmatprep.subr.mxu1 %v2965_v40  ;;  %v3000_v47 = vand.u32 4294901760, %v2999_v55  ;;  %v6425_v18 = vand.u32 4294901760, %v6414_v26 }
 0x789   :  { %4663 = vmatprep.subr.mxu0 %v6299_v11  ;;  %4697 = vmatpush3.msra.mxu1 %v2965_v40  ;;  %v6416_v40 = vand.u32 4294901760, %v2823_v53  ;;  %v3021_v32 = vand.u32 4294901760, %v3020_v36 }
 0x78a   :  { %4664 = vmatpush3.msra.mxu0 %v6299_v11  ;;  %4698 = vmatprep.subr.mxu1 %v2972_v41  ;;  %6705 = vst [vmem:[#allocation26_spill] sm:$0xff] %v6425_v18 }
 0x78b   :  { %4665 = vmatprep.subr.mxu0 %v6311_v43  ;;  %4699 = vmatpush3.msra.mxu1 %v2972_v41  ;;  %v3027_v41 = vsub.f32 %v6401_v13, %v6411_v56  ;;  %v6428_v29 = vsub.f32 %v2823_v53, %v6416_v40 }
 0x78c   :  { %4666 = vmatpush3.msra.mxu0 %v6311_v43  ;;  %4700 = vmatprep.subr.mxu1 %v2979_v39 }
 0x78d   :  { %4667 = vmatprep.subr.mxu0 %v6324_v48  ;;  %4701 = vmatpush3.msra.mxu1 %v2979_v39  ;;  %v6430_v39 = vand.u32 4294901760, %v2822_v12  ;;  %v3028_v57 = vand.u32 4294901760, %v3027_v41  ;;  %v6437_v14 = vand.u32 4294901760, %v6428_v29 }
 0x78e   :  { %4668 = vmatpush3.msra.mxu0 %v6324_v48  ;;  %4702 = vmatprep.subr.mxu1 %v2986_v63 }
 0x78f   :  { %4669 = vmatprep.subr.mxu0 %v6332_v8  ;;  %4703 = vmatpush3.msra.mxu1 %v2986_v63  ;;  %v3034_v63 = vsub.f32 %v6414_v26, %v6425_v18  ;;  %6706 = vst [vmem:[#allocation27_spill] sm:$0xff] %v6437_v14  ;;  %v3041_v4 = vsub.f32 %v6428_v29, %v6437_v14 }
 0x790   :  { %4670 = vmatpush3.msra.mxu0 %v6332_v8  ;;  %4704 = vmatprep.subr.mxu1 %v2993_v28 }
 0x791   :  { %4671 = vmatprep.subr.mxu0 %v6343_v16  ;;  %4705 = vmatpush3.msra.mxu1 %v2993_v28  ;;  %v6440_v28 = vsub.f32 %v2822_v12, %v6430_v39  ;;  %v3035_v55 = vand.u32 4294901760, %v3034_v63  ;;  %v3042_v7 = vand.u32 4294901760, %v3041_v4 }
 0x792   :  { %4672 = vmatpush3.msra.mxu0 %v6343_v16  ;;  %4706 = vmatprep.subr.mxu1 %v3000_v47 }
 0x793   :  { %4673 = vmatprep.subr.mxu0 %v6356_v1  ;;  %4707 = vmatpush3.msra.mxu1 %v3000_v47  ;;  %v6447_v47 = vand.u32 4294901760, %v6440_v28 }
 0x794   :  { %4674 = vmatpush3.msra.mxu0 %v6356_v1  ;;  %4708 = vmatprep.subr.mxu1 %v3007_v19 }
 0x795   :  { %4675 = vmatprep.subr.mxu0 %v6370_v38  ;;  %4709 = vmatpush3.msra.mxu1 %v3007_v19  ;;  %6707 = vst [vmem:[#allocation28_spill] sm:$0xff] %v6447_v47  ;;  %v3048_v53 = vsub.f32 %v6440_v28, %v6447_v47 }
 0x796   :  { %4676 = vmatpush3.msra.mxu0 %v6370_v38  ;;  %4710 = vmatprep.subr.mxu1 %v3014_v30 }
 0x797   :  { %4677 = vmatprep.subr.mxu0 %v6383_v62  ;;  %4711 = vmatpush3.msra.mxu1 %v3014_v30  ;;  %v3049_v12 = vand.u32 4294901760, %v3048_v53 }
 0x798   :  { %4678 = vmatpush3.msra.mxu0 %v6383_v62  ;;  %4712 = vmatprep.subr.mxu1 %v3021_v32 }
 0x799   :  { %4679 = vmatprep.subr.mxu0 %v6391_v51  ;;  %4713 = vmatpush3.msra.mxu1 %v3021_v32 }
 0x79a   :  { %4680 = vmatpush3.msra.mxu0 %v6391_v51  ;;  %4714 = vmatprep.subr.mxu1 %v3028_v57 }
 0x79b   :  { %4681 = vmatprep.subr.mxu0 %v6403_v25  ;;  %4715 = vmatpush3.msra.mxu1 %v3028_v57 }
 0x79c   :  { %4682 = vmatpush3.msra.mxu0 %v6403_v25  ;;  %4716 = vmatprep.subr.mxu1 %v3035_v55 }
 0x79d   :  { %4683 = vmatprep.subr.mxu0 %v6416_v40  ;;  %4717 = vmatpush3.msra.mxu1 %v3035_v55 }
 0x79e   :  { %4684 = vmatpush3.msra.mxu0 %v6416_v40  ;;  %4718 = vmatprep.subr.mxu1 %v3042_v7 }
 0x79f   :  { %4685 = vmatprep.subr.mxu0 %v6430_v39  ;;  %4719 = vmatpush3.msra.mxu1 %v3042_v7 }
 0x7a0   :  { %4686 = vmatpush3.msra.mxu0 %v6430_v39  ;;  %4720 = vmatprep.subr.mxu1 %v3049_v12 }
 0x7a1   :  { %4725 = vmatprep.subr.mxu0 %v6265_v31  ;;  %4721 = vmatpush3.msra.mxu1 %v3049_v12 }
 0x7a2   :  { %4760 = vmatprep.subr.mxu1 %v6260_v45 }
 0x7cf   :  { %v4424_v23 = vpop.f32.mrf.mxu1 }
 0x7d1   :  { %v1781_v6 = vpop.f32.mrf.mxu1 }
 0x7d3   :  { %v4434_v49 = vpop.f32.mrf.mxu1 }
 0x7d5   :  { %v1942_v41 = vpop.f32.mrf.mxu1 }
 0x7d7   :  { %v4419_v3 = vpop.f32.mrf.mxu0 }
 0x7d8   :  { %v1788_v19 = vadd.f32 %v4424_v23, %v4419_v3  ;;  %v4444_v23 = vpop.f32.mrf.mxu1 }
 0x7d9   :  { %v1695_v30 = vpop.f32.mrf.mxu0 }
 0x7da   :  { %v1782_v36 = vadd.f32 %v1781_v6, %v1695_v30  ;;  %v2102_v53 = vpop.f32.mrf.mxu1 }
 0x7db   :  { %v4429_v32 = vpop.f32.mrf.mxu0 }
 0x7dc   :  { %v1869_v63 = vadd.f32 %v4429_v32, %v1788_v19 }
 0x7dd   :  { %v1861_v14 = vpop.f32.mrf.mxu0 }
 0x7de   :  { %v1862_v18 = vadd.f32 %v1861_v14, %v1782_v36  ;;  %v1951_v56 = vadd.f32 %v4434_v49, %v1869_v63 }
 0x7df   :  { %v4439_v57 = vpop.f32.mrf.mxu0 }
 0x7e0   :  { %v2031_v4 = vadd.f32 %v4439_v57, %v1951_v56  ;;  %v1943_v3 = vadd.f32 %v1942_v41, %v1862_v18 }
 0x7e1   :  { %v2024_v47 = vpop.f32.mrf.mxu0 }
 0x7e2   :  { %v6454_v6 = vadd.f32 %v4444_v23, %v2031_v4  ;;  %v2025_v55 = vadd.f32 %v2024_v47, %v1943_v3 }
 0x7e4   :  { %6708 = vst [vmem:[#allocation13_spill] sm:$0xff] %v6454_v6  ;;  %v6456_v30 = vadd.f32 %v2102_v53, %v2025_v55 }
 0x7e6   :  { %6709 = vst [vmem:[#allocation20_spill] sm:$0xff] %v6456_v30 }
 0x7fa   :  { %v4514_v7 = vpop.f32.mrf.mxu1 }
 0x7fc   :  { %v2376_v14 = vpop.f32.mrf.mxu1 }
 0x7ff   :  { %v4479_v19 = vpop.f32.mrf.mxu0 }
 0x800   :  { %v2383_v49 = vadd.f32 %v4514_v7, %v4479_v19 }
 0x801   :  { %v2215_v32 = vpop.f32.mrf.mxu0 }
 0x802   :  { %v2377_v63 = vadd.f32 %v2376_v14, %v2215_v32 }
 0x81f   :  { %v4549_v24 = vpop.f32.mrf.mxu0 }
 0x820   :  { %v4584_v36 = vpop.f32.mrf.mxu1  ;;  %v2494_v33 = vadd.f32 %v4549_v24, %v2383_v49 }
 0x821   :  { %v2486_v12 = vpop.f32.mrf.mxu0 }
 0x822   :  { %v2487_v61 = vadd.f32 %v2486_v12, %v2377_v63  ;;  %v2582_v56 = vpop.f32.mrf.mxu1  ;;  %v2591_v18 = vadd.f32 %v4584_v36, %v2494_v33 }
 0x824   :  { %v2583_v23 = vadd.f32 %v2582_v56, %v2487_v61 }
 0x840   :  { %v4619_v41 = vpop.f32.mrf.mxu0 }
 0x841   :  { %v2716_v57 = vadd.f32 %v4619_v41, %v2591_v18  ;;  %v4654_v47 = vpop.f32.mrf.mxu1 }
 0x842   :  { %v2709_v4 = vpop.f32.mrf.mxu0 }
 0x843   :  { %v2809_v3 = vadd.f32 %v4654_v47, %v2716_v57  ;;  %v2710_v55 = vadd.f32 %v2709_v4, %v2583_v23  ;;  %v2802_v53 = vpop.f32.mrf.mxu1 }
 0x845   :  { %v2815_v30 = vmul.f32 0.70710677, %v2809_v3  ;;  %v2803_v6 = vadd.f32 %v2802_v53, %v2710_v55  ;;  %v2813_v7 = vmul.f32 0.5, %v2809_v3 }
 0x847   :  { %4879 = verf.f32 %v2815_v30  ;;  %v2814_v35 = vmul.f32 0.70710677, %v2803_v6  ;;  %v2812_v49 = vmul.f32 0.5, %v2803_v6 }
 0x849   :  { %4881 = verf.f32 %v2814_v35 }
 0x854   :  { %v4880_v19 = vpop.eup %4879 }
 0x855   :  { %v2819_v32 = vadd.f32 1.0, %v4880_v19 }
 0x856   :  { %v4882_v24 = vpop.eup %4881 }
 0x857   :  { %v2821_v14 = vmul.f32 %v2819_v32, %v2813_v7  ;;  %v2818_v33 = vadd.f32 1.0, %v4882_v24 }
 0x859   :  { %v6458_v36 = vand.u32 4294901760, %v2821_v14  ;;  %v2820_v61 = vmul.f32 %v2818_v33, %v2812_v49 }
 0x85b   :  { %v6461_v12 = vsub.f32 %v2821_v14, %v6458_v36  ;;  %v6463_v63 = vand.u32 4294901760, %v2820_v61 }
 0x85d   :  { %v2920_v56 = vsub.f32 %v2820_v61, %v6463_v63  ;;  %4722 = vmatprep.mubr.f32.mxu1 %v6463_v63  ;;  %v2931_v35 = vand.u32 4294901760, %v6461_v12 }
 0x85e   :  { %4723 = vmatmul.mubr.f32.vlgmr.msra.gmra.mxu1 %v6458_v36 }
 0x85f   :  { %4761 = vmatpush3.msra.mxu1 %v6260_v45  ;;  %v2921_v6 = vand.u32 4294901760, %v2920_v56  ;;  %v2932_v30 = vsub.f32 %v6461_v12, %v2931_v35 }
 0x860   :  { %4762 = vmatprep.subr.mxu1 %v6262_v58 }
 0x861   :  { %4763 = vmatpush3.msra.mxu1 %v6262_v58  ;;  %4792 = vmatprep.mubr.f32.mxu1 %v2921_v6  ;;  %v2922_v18 = vsub.f32 %v2920_v56, %v2921_v6  ;;  %v2933_v23 = vand.u32 4294901760, %v2932_v30 }
 0x862   :  { %4764 = vmatprep.subr.mxu1 %v6284_v27 }
 0x863   :  { %4765 = vmatpush3.msra.mxu1 %v6284_v27  ;;  %v2923_v41 = vand.u32 4294901760, %v2922_v18 }
 0x864   :  { %4766 = vmatprep.subr.mxu1 %v6289_v2 }
 0x865   :  { %4767 = vmatpush3.msra.mxu1 %v6289_v2  ;;  %4687 = vmatprep.mubr.f32.mxu0 %v2923_v41 }
 0x866   :  { %4768 = vmatprep.subr.mxu1 %v6299_v11  ;;  %4688 = vmatmul.mubr.f32.vlgmr.msra.gmra.mxu0 %v2933_v23 }
 0x867   :  { %4726 = vmatpush3.msra.mxu0 %v6265_v31  ;;  %4769 = vmatpush3.msra.mxu1 %v6299_v11  ;;  %v6712_v31 = vld [vmem:[#allocation23_spill] sm:$0xff] }
 0x868   :  { %4727 = vmatprep.subr.mxu0 %v6268_v9  ;;  %4757 = vmatprep.mubr.f32.mxu0 %v2920_v56 }
 0x869   :  { %4770 = vmatprep.subr.mxu1 %v6311_v43  ;;  %4728 = vmatpush3.msra.mxu0 %v6268_v9  ;;  %v6713_v9 = vld [vmem:[#allocation24_spill] sm:$0xff] }
 0x86a   :  { %4771 = vmatpush3.msra.mxu1 %v6311_v43  ;;  %4729 = vmatprep.subr.mxu0 %v6287_v50 }
 0x86b   :  { %4772 = vmatprep.subr.mxu1 %v6324_v48  ;;  %4730 = vmatpush3.msra.mxu0 %v6287_v50  ;;  %v6717_v50 = vld [vmem:[#allocation28_spill] sm:$0xff] }
 0x86c   :  { %4773 = vmatpush3.msra.mxu1 %v6324_v48  ;;  %4731 = vmatprep.subr.mxu0 %v6297_v10 }
 0x86d   :  { %4774 = vmatprep.subr.mxu1 %v6332_v8  ;;  %4732 = vmatpush3.msra.mxu0 %v6297_v10 }
 0x86e   :  { %4775 = vmatpush3.msra.mxu1 %v6332_v8  ;;  %4733 = vmatprep.subr.mxu0 %v6309_v34 }
 0x86f   :  { %4776 = vmatprep.subr.mxu1 %v6343_v16  ;;  %4734 = vmatpush3.msra.mxu0 %v6309_v34 }
 0x870   :  { %4777 = vmatpush3.msra.mxu1 %v6343_v16  ;;  %4735 = vmatprep.subr.mxu0 %v6321_v20 }
 0x871   :  { %4778 = vmatprep.subr.mxu1 %v6356_v1  ;;  %4736 = vmatpush3.msra.mxu0 %v6321_v20 }
 0x872   :  { %4779 = vmatpush3.msra.mxu1 %v6356_v1  ;;  %4737 = vmatprep.subr.mxu0 %v6335_v37 }
 0x873   :  { %4780 = vmatprep.subr.mxu1 %v6370_v38  ;;  %4738 = vmatpush3.msra.mxu0 %v6335_v37 }
 0x874   :  { %4781 = vmatpush3.msra.mxu1 %v6370_v38  ;;  %4739 = vmatprep.subr.mxu0 %v6341_v15 }
 0x875   :  { %4782 = vmatprep.subr.mxu1 %v6383_v62  ;;  %4740 = vmatpush3.msra.mxu0 %v6341_v15 }
 0x876   :  { %4783 = vmatpush3.msra.mxu1 %v6383_v62  ;;  %4741 = vmatprep.subr.mxu0 %v6354_v60 }
 0x877   :  { %4784 = vmatprep.subr.mxu1 %v6391_v51  ;;  %4742 = vmatpush3.msra.mxu0 %v6354_v60 }
 0x878   :  { %4785 = vmatpush3.msra.mxu1 %v6391_v51  ;;  %4743 = vmatprep.subr.mxu0 %v6368_v46 }
 0x879   :  { %4786 = vmatprep.subr.mxu1 %v6403_v25  ;;  %4744 = vmatpush3.msra.mxu0 %v6368_v46 }
 0x87a   :  { %4787 = vmatpush3.msra.mxu1 %v6403_v25  ;;  %4745 = vmatprep.subr.mxu0 %v6380_v17 }
 0x87b   :  { %4788 = vmatprep.subr.mxu1 %v6416_v40  ;;  %4746 = vmatpush3.msra.mxu0 %v6380_v17  ;;  %v6718_v17 = vld [vmem:[#allocation13_spill] sm:$0xff] }
 0x87c   :  { %4789 = vmatpush3.msra.mxu1 %v6416_v40  ;;  %4747 = vmatprep.subr.mxu0 %v6395_v54 }
 0x87d   :  { %4790 = vmatprep.subr.mxu1 %v6430_v39  ;;  %4748 = vmatpush3.msra.mxu0 %v6395_v54  ;;  %v6719_v54 = vld [vmem:[#allocation20_spill] sm:$0xff] }
 0x87e   :  { %4791 = vmatpush3.msra.mxu1 %v6430_v39  ;;  %4749 = vmatprep.subr.mxu0 %v6401_v13 }
 0x87f   :  { %4793 = vmatmul.mubr.f32.vlgmr.msra.gmra.mxu1 %v2931_v35  ;;  %4830 = vmatprep.subr.mxu1 %v6260_v45 }
 0x880   :  { %4750 = vmatpush3.msra.mxu0 %v6401_v13  ;;  %4831 = vmatpush3.msra.mxu1 %v6260_v45  ;;  %v6710_v45 = vld [vmem:[#allocation18_spill] sm:$0xff] }
 0x881   :  { %4862 = vmatprep.mubr.f32.mxu1 %v6463_v63  ;;  %4751 = vmatprep.subr.mxu0 %v6414_v26 }
 0x882   :  { %4832 = vmatprep.subr.mxu1 %v6262_v58  ;;  %4752 = vmatpush3.msra.mxu0 %v6414_v26 }
 0x883   :  { %4833 = vmatpush3.msra.mxu1 %v6262_v58  ;;  %4753 = vmatprep.subr.mxu0 %v6428_v29  ;;  %v6711_v58 = vld [vmem:[#allocation22_spill] sm:$0xff] }
 0x884   :  { %4834 = vmatprep.subr.mxu1 %v6284_v27  ;;  %4754 = vmatpush3.msra.mxu0 %v6428_v29 }
 0x885   :  { %4835 = vmatpush3.msra.mxu1 %v6284_v27  ;;  %4755 = vmatprep.subr.mxu0 %v6440_v28  ;;  %v6716_v27 = vld [vmem:[#allocation27_spill] sm:$0xff] }
 0x886   :  { %4836 = vmatprep.subr.mxu1 %v6289_v2  ;;  %4756 = vmatpush3.msra.mxu0 %v6440_v28 }
 0x887   :  { %4837 = vmatpush3.msra.mxu1 %v6289_v2  ;;  %4758 = vmatmul.mubr.f32.vlgmr.msra.gmra.mxu0 %v6461_v12 }
 0x888   :  { %4795 = vmatprep.subr.mxu0 %v6273_v21  ;;  %4838 = vmatprep.subr.mxu1 %v6299_v11 }
 0x889   :  { %4796 = vmatpush3.msra.mxu0 %v6273_v21  ;;  %4827 = vmatprep.mubr.f32.mxu0 %v6463_v63  ;;  %v6714_v21 = vld [vmem:[#allocation25_spill] sm:$0xff] }
 0x88a   :  { %4839 = vmatpush3.msra.mxu1 %v6299_v11  ;;  %4797 = vmatprep.subr.mxu0 %v6276_v52 }
 0x88b   :  { %4840 = vmatprep.subr.mxu1 %v6311_v43  ;;  %4798 = vmatpush3.msra.mxu0 %v6276_v52  ;;  %v6715_v52 = vld [vmem:[#allocation26_spill] sm:$0xff] }
 0x88c   :  { %4841 = vmatpush3.msra.mxu1 %v6311_v43  ;;  %4799 = vmatprep.subr.mxu0 %v6294_v5 }
 0x88d   :  { %4842 = vmatprep.subr.mxu1 %v6324_v48  ;;  %4800 = vmatpush3.msra.mxu0 %v6294_v5 }
 0x88e   :  { %4843 = vmatpush3.msra.mxu1 %v6324_v48  ;;  %4801 = vmatprep.subr.mxu0 %v6306_v0 }
 0x88f   :  { %4844 = vmatprep.subr.mxu1 %v6332_v8  ;;  %4802 = vmatpush3.msra.mxu0 %v6306_v0 }
 0x890   :  { %4845 = vmatpush3.msra.mxu1 %v6332_v8  ;;  %4803 = vmatprep.subr.mxu0 %v6318_v59 }
 0x891   :  { %4846 = vmatprep.subr.mxu1 %v6343_v16  ;;  %4804 = vmatpush3.msra.mxu0 %v6318_v59 }
 0x892   :  { %4847 = vmatpush3.msra.mxu1 %v6343_v16  ;;  %4805 = vmatprep.subr.mxu0 %v6330_v44 }
 0x893   :  { %4848 = vmatprep.subr.mxu1 %v6356_v1  ;;  %4806 = vmatpush3.msra.mxu0 %v6330_v44 }
 0x894   :  { %4849 = vmatpush3.msra.mxu1 %v6356_v1  ;;  %4807 = vmatprep.subr.mxu0 %v6347_v22 }
 0x895   :  { %4850 = vmatprep.subr.mxu1 %v6370_v38  ;;  %4808 = vmatpush3.msra.mxu0 %v6347_v22 }
 0x896   :  { %4851 = vmatpush3.msra.mxu1 %v6370_v38  ;;  %4809 = vmatprep.subr.mxu0 %v6351_v42 }
 0x897   :  { %4852 = vmatprep.subr.mxu1 %v6383_v62  ;;  %4810 = vmatpush3.msra.mxu0 %v6351_v42 }
 0x898   :  { %4853 = vmatpush3.msra.mxu1 %v6383_v62  ;;  %4811 = vmatprep.subr.mxu0 %v6710_v45 }
 0x899   :  { %4854 = vmatprep.subr.mxu1 %v6391_v51  ;;  %4812 = vmatpush3.msra.mxu0 %v6710_v45 }
 0x89a   :  { %4855 = vmatpush3.msra.mxu1 %v6391_v51  ;;  %4813 = vmatprep.subr.mxu0 %v6711_v58 }
 0x89b   :  { %4856 = vmatprep.subr.mxu1 %v6403_v25  ;;  %4814 = vmatpush3.msra.mxu0 %v6711_v58 }
 0x89c   :  { %4857 = vmatpush3.msra.mxu1 %v6403_v25  ;;  %4815 = vmatprep.subr.mxu0 %v6712_v31 }
 0x89d   :  { %4858 = vmatprep.subr.mxu1 %v6416_v40  ;;  %4816 = vmatpush3.msra.mxu0 %v6712_v31 }
 0x89e   :  { %4859 = vmatpush3.msra.mxu1 %v6416_v40  ;;  %4817 = vmatprep.subr.mxu0 %v6713_v9 }
 0x89f   :  { %4860 = vmatprep.subr.mxu1 %v6430_v39  ;;  %4818 = vmatpush3.msra.mxu0 %v6713_v9 }
 0x8a0   :  { %4861 = vmatpush3.msra.mxu1 %v6430_v39  ;;  %4819 = vmatprep.subr.mxu0 %v6714_v21 }
 0x8a1   :  { %4863 = vmatmul.mubr.f32.vlgmr.msra.gmra.mxu1 %v6458_v36  ;;  %4820 = vmatpush3.msra.mxu0 %v6714_v21 }
 0x8a2   :  { %4821 = vmatprep.subr.mxu0 %v6715_v52 }
 0x8a3   :  { %4822 = vmatpush3.msra.mxu0 %v6715_v52 }
 0x8a4   :  { %4823 = vmatprep.subr.mxu0 %v6716_v27 }
 0x8a5   :  { %4824 = vmatpush3.msra.mxu0 %v6716_v27 }
 0x8a6   :  { %4825 = vmatprep.subr.mxu0 %v6717_v50 }
 0x8a7   :  { %4826 = vmatpush3.msra.mxu0 %v6717_v50 }
 0x8a8   :  { %4828 = vmatmul.mubr.f32.vlgmr.msra.gmra.mxu0 %v6458_v36 }
 0x91e   :  { %v4724_v5 = vpop.f32.mrf.mxu1 }
 0x920   :  { %v3086_v0 = vpop.f32.mrf.mxu1 }
 0x926   :  { %v4689_v2 = vpop.f32.mrf.mxu0 }
 0x927   :  { %v3093_v34 = vadd.f32 %v4724_v5, %v4689_v2 }
 0x928   :  { %v2925_v10 = vpop.f32.mrf.mxu0 }
 0x929   :  { %v3087_v20 = vadd.f32 %v3086_v0, %v2925_v10 }
 0x93f   :  { %v4794_v43 = vpop.f32.mrf.mxu1 }
 0x941   :  { %v3292_v8 = vpop.f32.mrf.mxu1 }
 0x947   :  { %v4759_v11 = vpop.f32.mrf.mxu0 }
 0x948   :  { %v3204_v48 = vadd.f32 %v4759_v11, %v3093_v34 }
 0x949   :  { %v3196_v59 = vpop.f32.mrf.mxu0 }
 0x94a   :  { %v3197_v44 = vadd.f32 %v3196_v59, %v3087_v20  ;;  %v3301_v37 = vadd.f32 %v4794_v43, %v3204_v48 }
 0x94c   :  { %v3293_v42 = vadd.f32 %v3292_v8, %v3197_v44 }
 0x961   :  { %v4864_v15 = vpop.f32.mrf.mxu1 }
 0x963   :  { %v3512_v38 = vpop.f32.mrf.mxu1 }
 0x968   :  { %v4829_v16 = vpop.f32.mrf.mxu0 }
 0x969   :  { %v3426_v22 = vadd.f32 %v4829_v16, %v3301_v37 }
 0x96a   :  { %v3419_v60 = vpop.f32.mrf.mxu0 }
 0x96b   :  { %v3519_v1 = vadd.f32 %v4864_v15, %v3426_v22  ;;  %v3420_v46 = vadd.f32 %v3419_v60, %v3293_v42 }
 0x96d   :  { %v3523_v62 = vmul.f32 %v3519_v1, %v6718_v17  ;;  %v3513_v51 = vadd.f32 %v3512_v38, %v3420_v46 }
 0x96f   :  { %3525 = vst [vmem:[#allocation9 + $0x8] sm:$0xff] %v3523_v62  ;;  %v3522_v13 = vmul.f32 %v3513_v51, %v6719_v54 }
 0x971   :  { %3524 = vst [vmem:[#allocation9] sm:$0xff] %v3522_v13 }
 0x972   :  { %4954 = shalt.err (!%p4951_p5)
}
 0x973   :  { %3537 = dma.vmem_to_hbm [thread:$0]  %s3532_s18, 256, %s6621_s8, [#allocation5], %s4971_s10, %s4971_s10, %s4972_s11  }
 0x974   :  { %4967 = dma.done.wait [#allocation5], 256  }
 0x975   :  { %4968 = vsyncadd [#allocation5], 4294967040 }
 0x976   :  { %3541 = vsyncpa [#allocation4], 1 }
 0x977   :  { %3542 = vsyncpa [#allocation7], 1 }
 0x978   :  { %3543 = vsyncpa [#allocation5], 1 }

</bundles_post_ra>
